<compile_context>
chip_gen: v7x
topology: tpu7x:2x2x1
jax: 0.10.0
libtpu: 0.0.40
codegen_flags: <defaults>
</compile_context>

<pallas_src>
import jax
import jax.numpy as jnp
from jax.experimental import pallas as pl
from jax.experimental.pallas import tpu as pltpu

# ---- module hyperparameters -------------------------------------------------
INP, OUP, K, S, EXPAND, SE_ON = 4, 4, 3, 1, 4, True
HID = INP * EXPAND             # 16
RED = HID // 4                 # SE reduction width = 4
PAD = K // 2                   # 1
B, H, W = 2, 16, 16
HW = H * W                     # 256  (lane axis)
BN_EPS = 1e-5
USE_RES = (S == 1 and INP == OUP)

BC_IN = B * INP                # 8   fused (batch, channel) rows
BC_HID = B * HID               # 32
BC_OUT = B * OUP               # 8
LPAD = 128                     # lane-aligned spatial padding for the depthwise conv


def _relu6(x):
    return jnp.minimum(jnp.maximum(x, 0.0), 6.0)


def mbconv_kernel(x_ref, w1_ref, b1_ref, wd_ref, b2_ref,
                  wse1_ref, wse2_ref, w3_ref, b3_ref, o_ref):
    """Single resident invocation; all tensors are (channels, H*W=256) lane-dense."""
    x = x_ref[...]                                                  # (B*INP, 256)

    # ---- 1x1 expand conv (batch fused via block-diag weight) + BN bias + ReLU6
    h = jnp.dot(w1_ref[...], x, preferred_element_type=jnp.float32)  # (B*HID, 256)
    h = _relu6(h + b1_ref[...])

    # ---- 3x3 depthwise conv, stride 1, pad 1 (BN folded into taps) + ReLU6 --
    # Lane-aligned zero pad of the flattened spatial axis: vertical neighbours
    # become plain shifted windows; only horizontal wrap-around across image
    # rows needs a mask.
    zpad = jnp.zeros((BC_HID, LPAD), jnp.float32)
    hp = jnp.concatenate([zpad, h, zpad], axis=1)                   # (B*HID, 512)
    xx = jax.lax.broadcasted_iota(jnp.int32, (1, HW), 1) % W        # x coord per lane
    wdw = wd_ref[...]                                               # (B*HID, 9) folded taps

    acc = jnp.zeros((BC_HID, HW), jnp.float32)
    for ky in range(K):
        for kx in range(K):
            oy, ox = ky - PAD, kx - PAD
            if oy == 0 and ox == 0:
                tap = h
            else:
                start = LPAD + oy * W + ox
                tap = hp[:, start:start + HW]                       # shifted window
            if ox != 0:                                             # mask row wrap-around
                tap = jnp.where((xx + ox >= 0) & (xx + ox < W), tap, 0.0)
            t = ky * K + kx
            acc = acc + tap * wdw[:, t:t + 1]
    d = _relu6(acc + b2_ref[...])                                   # (B*HID, 256)

    # ---- Squeeze-and-Excitation (VPU mul + XLU reduce, no M=1 MXU pushes) ---
    if SE_ON:
        gates = []
        for b in range(B):
            db = d[b * HID:(b + 1) * HID, :]                        # (HID, 256)
            y = jnp.mean(db, axis=1, keepdims=True)                 # (HID, 1) global avg pool
            z = jnp.maximum(
                jnp.sum(wse1_ref[...] * y, axis=0, keepdims=True), 0.0)   # (1, RED)
            g = jax.nn.sigmoid(
                jnp.sum(wse2_ref[...] * z, axis=1, keepdims=True))        # (HID, 1)
            gates.append(g)
        d = d * jnp.concatenate(gates, axis=0)                      # per-(batch,channel) gate

    # ---- 1x1 projection conv (batch fused) + BN bias (no activation) --------
    out = jnp.dot(w3_ref[...], d, preferred_element_type=jnp.float32)  # (B*OUP, 256)
    out = out + b3_ref[...]
    if USE_RES:
        out = out + x
    o_ref[...] = out


def _full(shape):
    # Whole-array block, resident for the single grid step.
    return pl.BlockSpec(shape, lambda i: (0,) * len(shape))


@jax.jit
def mbconv_forward(x_nchw, packed):
    """x_nchw: (B, INP, H, W) f32 -> (B, OUP, H, W). Pure reshapes, no transposes."""
    (w1, b1, wd, b2, wse1, wse2, w3, b3) = packed
    x = x_nchw.reshape(BC_IN, HW).astype(jnp.float32)
    out = pl.pallas_call(
        mbconv_kernel,
        out_shape=jax.ShapeDtypeStruct((BC_OUT, HW), jnp.float32),
        grid=(1,),
        in_specs=[
            _full((BC_IN, HW)),
            _full((BC_HID, BC_IN)), _full((BC_HID, 1)),
            _full((BC_HID, K * K)), _full((BC_HID, 1)),
            _full((HID, RED)), _full((HID, RED)),
            _full((BC_OUT, BC_HID)), _full((BC_OUT, 1)),
        ],
        out_specs=_full((BC_OUT, HW)),
        compiler_params=pltpu.CompilerParams(dimension_semantics=("arbitrary",)),
    )(x, w1, b1, wd, b2, wse1, wse2, w3, b3)
    return out.reshape(B, OUP, H, W)


# ---- parameters (BN folded into conv weights at init, per perf review) ------
def init_params(key):
    ks = jax.random.split(key, 11)

    def bn_fold(kg, kb, c):
        gamma = jax.random.uniform(kg, (c,), jnp.float32, 0.5, 1.5)
        beta = jax.random.normal(kb, (c,), jnp.float32) * 0.1
        mean = jnp.zeros((c,), jnp.float32)       # PyTorch BN running-stat init
        var = jnp.ones((c,), jnp.float32)
        scale = gamma * jax.lax.rsqrt(var + BN_EPS)
        bias = beta - mean * scale
        return scale, bias

    w1 = jax.random.normal(ks[0], (HID, INP), jnp.float32) * 0.1     # Conv2d(inp, hid, 1)
    s1, b1 = bn_fold(ks[1], ks[2], HID)
    wd = jax.random.normal(ks[3], (HID, K, K), jnp.float32) * 0.1    # depthwise Conv2d
    s2, b2 = bn_fold(ks[4], ks[5], HID)
    wse1 = jax.random.normal(ks[6], (RED, HID), jnp.float32) * 0.1   # Linear(HID, RED), bias=False
    wse2 = jax.random.normal(ks[7], (HID, RED), jnp.float32) * 0.1   # Linear(RED, HID), bias=False
    w3 = jax.random.normal(ks[8], (OUP, HID), jnp.float32) * 0.1     # Conv2d(hid, oup, 1)
    s3, b3 = bn_fold(ks[9], ks[10], OUP)

    return dict(
        w1=s1[:, None] * w1, b1=b1,               # BN1 folded into expand weights
        wd=s2[:, None, None] * wd, b2=b2,         # BN2 folded into depthwise taps
        wse1=wse1, wse2=wse2,
        w3=s3[:, None] * w3, b3=b3,               # BN3 folded into projection weights
    )


def pack_params(p):
    """Kernel-ready forms: block-diagonal 1x1 weights (batch fused), tiled taps/biases."""
    eye = jnp.eye(B, dtype=jnp.float32)
    w1_bd = jnp.kron(eye, p["w1"])                                   # (B*HID, B*INP)
    w3_bd = jnp.kron(eye, p["w3"])                                   # (B*OUP, B*HID)
    wd_bd = jnp.tile(p["wd"].reshape(HID, K * K), (B, 1))            # (B*HID, 9)
    b1_bd = jnp.tile(p["b1"], B)[:, None]                            # (B*HID, 1)
    b2_bd = jnp.tile(p["b2"], B)[:, None]                            # (B*HID, 1)
    b3_bd = jnp.tile(p["b3"], B)[:, None]                            # (B*OUP, 1)
    wse1_k = p["wse1"].T                                             # (HID, RED)
    wse2_k = p["wse2"]                                               # (HID, RED)
    return (w1_bd, b1_bd, wd_bd, b2_bd, wse1_k, wse2_k, w3_bd, b3_bd)


# ---- pure-JAX (non-Pallas) reference using the same folded parameters -------
def mbconv_reference(x, p):
    prec = jax.lax.Precision.HIGHEST
    h = jnp.einsum("oc,bchw->bohw", p["w1"], x, precision=prec)
    h = jnp.clip(h + p["b1"][None, :, None, None], 0.0, 6.0)
    hpad = jnp.pad(h, ((0, 0), (0, 0), (PAD, PAD), (PAD, PAD)))
    d = jnp.zeros_like(h)
    for ky in range(K):
        for kx in range(K):
            d = d + hpad[:, :, ky:ky + H, kx:kx + W] * p["wd"][None, :, ky, kx, None, None]
    d = jnp.clip(d + p["b2"][None, :, None, None], 0.0, 6.0)
    if SE_ON:
        y = d.mean(axis=(2, 3))                                      # (B, HID)
        z = jnp.maximum(y @ p["wse1"].T, 0.0)                        # (B, RED)
        g = jax.nn.sigmoid(z @ p["wse2"].T)                          # (B, HID)
        d = d * g[:, :, None, None]
    out = jnp.einsum("oc,bchw->bohw", p["w3"], d, precision=prec)
    out = out + p["b3"][None, :, None, None]
    return out + x if USE_RES else out


if __name__ == "__main__":
    key = jax.random.PRNGKey(0)
    kx, kp = jax.random.split(key)
    x = jax.random.normal(kx, (B, INP, H, W), jnp.float32)   # NCHW, like PyTorch
    params = init_params(kp)
    packed = pack_params(params)

    y = mbconv_forward(x, packed)
    jax.block_until_ready(y)
    assert y.shape == (B, OUP, H, W) and y.dtype == jnp.float32

    y_ref = mbconv_reference(x, params)
    if not jnp.allclose(y, y_ref, atol=5e-2, rtol=5e-2):
        raise AssertionError(
            "Pallas kernel mismatch vs reference: max abs err = "
            f"{float(jnp.max(jnp.abs(y - y_ref)))}")
    print("KERNEL_OK")
</pallas_src>

<mosaic_0001>
module attributes {stable_mosaic.version = 11 : i64} {
  func.func @mbconv_kernel(%arg0: i32, %arg1: memref<8x256xf32, #tpu.memory_space<vmem>>, %arg2: memref<32x8xf32, #tpu.memory_space<vmem>>, %arg3: memref<32x1xf32, #tpu.memory_space<vmem>>, %arg4: memref<32x9xf32, #tpu.memory_space<vmem>>, %arg5: memref<32x1xf32, #tpu.memory_space<vmem>>, %arg6: memref<16x4xf32, #tpu.memory_space<vmem>>, %arg7: memref<16x4xf32, #tpu.memory_space<vmem>>, %arg8: memref<8x32xf32, #tpu.memory_space<vmem>>, %arg9: memref<8x1xf32, #tpu.memory_space<vmem>>, %arg10: memref<8x256xf32, #tpu.memory_space<vmem>>) attributes {dimension_semantics = [#tpu.dimension_semantics<arbitrary>], iteration_bounds = array<i64: 1>, scalar_prefetch = 0 : i64, scratch_operands = 0 : i64, tpu.core_type = #tpu.core_type<tc>, window_params = [{pipeline_mode = #tpu.pipeline_mode<synchronous>, transform_indices = @transform_0, window_bounds = array<i64: 8, 256>}, {pipeline_mode = #tpu.pipeline_mode<synchronous>, transform_indices = @transform_1, window_bounds = array<i64: 32, 8>}, {pipeline_mode = #tpu.pipeline_mode<synchronous>, transform_indices = @transform_2, window_bounds = array<i64: 32, 1>}, {pipeline_mode = #tpu.pipeline_mode<synchronous>, transform_indices = @transform_3, window_bounds = array<i64: 32, 9>}, {pipeline_mode = #tpu.pipeline_mode<synchronous>, transform_indices = @transform_4, window_bounds = array<i64: 32, 1>}, {pipeline_mode = #tpu.pipeline_mode<synchronous>, transform_indices = @transform_5, window_bounds = array<i64: 16, 4>}, {pipeline_mode = #tpu.pipeline_mode<synchronous>, transform_indices = @transform_6, window_bounds = array<i64: 16, 4>}, {pipeline_mode = #tpu.pipeline_mode<synchronous>, transform_indices = @transform_7, window_bounds = array<i64: 8, 32>}, {pipeline_mode = #tpu.pipeline_mode<synchronous>, transform_indices = @transform_8, window_bounds = array<i64: 8, 1>}, {pipeline_mode = #tpu.pipeline_mode<synchronous>, transform_indices = @transform_9, window_bounds = array<i64: 8, 256>}]} {
    %c0 = arith.constant 0 : index
    %c0_0 = arith.constant 0 : index
    %0 = vector.load %arg1[%c0, %c0_0] : memref<8x256xf32, #tpu.memory_space<vmem>>, vector<8x256xf32>
    %c0_1 = arith.constant 0 : index
    %c0_2 = arith.constant 0 : index
    %1 = vector.load %arg2[%c0_1, %c0_2] : memref<32x8xf32, #tpu.memory_space<vmem>>, vector<32x8xf32>
    %cst = arith.constant dense<0.000000e+00> : vector<32x256xf32>
    %2 = tpu.matmul %1, %0, %cst {dimension_numbers = #tpu.dot_dimension_numbers<[1], [0], [0], [1], [0, 0, 1, 1], [], []>} : vector<32x8xf32>, vector<8x256xf32>, vector<32x256xf32> -> vector<32x256xf32>
    %c0_3 = arith.constant 0 : index
    %c0_4 = arith.constant 0 : index
    %3 = vector.load %arg3[%c0_3, %c0_4] : memref<32x1xf32, #tpu.memory_space<vmem>>, vector<32x1xf32>
    %4 = vector.broadcast %3 : vector<32x1xf32> to vector<32x256xf32>
    %5 = arith.addf %2, %4 : vector<32x256xf32>
    %cst_5 = arith.constant 0.000000e+00 : f32
    %6 = vector.broadcast %cst_5 : f32 to vector<32x256xf32>
    %7 = arith.maximumf %5, %6 : vector<32x256xf32>
    %cst_6 = arith.constant 6.000000e+00 : f32
    %8 = vector.broadcast %cst_6 : f32 to vector<32x256xf32>
    %9 = arith.minimumf %7, %8 : vector<32x256xf32>
    %cst_7 = arith.constant 0.000000e+00 : f32
    %10 = vector.broadcast %cst_7 : f32 to vector<32x128xf32>
    %11 = tpu.concatenate %10, %9, %10 in 1 : vector<32x128xf32>, vector<32x256xf32>, vector<32x128xf32> -> vector<32x512xf32>
    %12 = tpu.iota {dimensions = array<i32: 1>} : vector<1x256xi32>
    %c16_i32 = arith.constant 16 : i32
    %c0_i32 = arith.constant 0 : i32
    %13 = arith.cmpi eq, %c16_i32, %c0_i32 : i32
    %c1_i32 = arith.constant 1 : i32
    %14 = arith.select %13, %c1_i32, %c16_i32 : i32
    %15 = vector.broadcast %14 : i32 to vector<1x256xi32>
    %16 = arith.remsi %12, %15 : vector<1x256xi32>
    %c0_i32_8 = arith.constant 0 : i32
    %17 = vector.broadcast %c0_i32_8 : i32 to vector<1x256xi32>
    %18 = arith.cmpi ne, %16, %17 : vector<1x256xi32>
    %c0_i32_9 = arith.constant 0 : i32
    %19 = vector.broadcast %c0_i32_9 : i32 to vector<1x256xi32>
    %20 = arith.cmpi slt, %16, %19 : vector<1x256xi32>
    %c0_i32_10 = arith.constant 0 : i32
    %21 = arith.cmpi slt, %14, %c0_i32_10 : i32
    %22 = vector.broadcast %21 : i1 to vector<1x256xi1>
    %23 = vector.broadcast %22 : vector<1x256xi1> to vector<1x256xi1>
    %24 = arith.xori %20, %23 : vector<1x256xi1>
    %25 = arith.andi %24, %18 : vector<1x256xi1>
    %26 = vector.broadcast %14 : i32 to vector<1x256xi32>
    %27 = arith.addi %16, %26 : vector<1x256xi32>
    %28 = arith.select %25, %27, %16 : vector<1x256xi1>, vector<1x256xi32>
    %c0_11 = arith.constant 0 : index
    %c0_12 = arith.constant 0 : index
    %29 = vector.load %arg4[%c0_11, %c0_12] : memref<32x9xf32, #tpu.memory_space<vmem>>, vector<32x9xf32>
    %cst_13 = arith.constant 0.000000e+00 : f32
    %30 = vector.broadcast %cst_13 : f32 to vector<32x256xf32>
    %31 = vector.extract_strided_slice %11 {offsets = [0, 111], sizes = [32, 256], strides = [1, 1]} : vector<32x512xf32> to vector<32x256xf32>
    %c-1_i32 = arith.constant -1 : i32
    %32 = vector.broadcast %c-1_i32 : i32 to vector<1x256xi32>
    %33 = arith.addi %28, %32 : vector<1x256xi32>
    %c0_i32_14 = arith.constant 0 : i32
    %34 = vector.broadcast %c0_i32_14 : i32 to vector<1x256xi32>
    %35 = arith.cmpi sge, %33, %34 : vector<1x256xi32>
    %c-1_i32_15 = arith.constant -1 : i32
    %36 = vector.broadcast %c-1_i32_15 : i32 to vector<1x256xi32>
    %37 = arith.addi %28, %36 : vector<1x256xi32>
    %c16_i32_16 = arith.constant 16 : i32
    %38 = vector.broadcast %c16_i32_16 : i32 to vector<1x256xi32>
    %39 = arith.cmpi slt, %37, %38 : vector<1x256xi32>
    %40 = arith.andi %35, %39 : vector<1x256xi1>
    %cst_17 = arith.constant 0.000000e+00 : f32
    %41 = vector.shape_cast %40 : vector<1x256xi1> to vector<1x256xi1>
    %42 = vector.broadcast %41 : vector<1x256xi1> to vector<32x256xi1>
    %43 = vector.broadcast %cst_17 : f32 to vector<32x256xf32>
    %44 = arith.select %42, %31, %43 : vector<32x256xi1>, vector<32x256xf32>
    %45 = vector.extract_strided_slice %29 {offsets = [0, 0], sizes = [32, 1], strides = [1, 1]} : vector<32x9xf32> to vector<32x1xf32>
    %46 = vector.broadcast %45 : vector<32x1xf32> to vector<32x256xf32>
    %47 = arith.mulf %44, %46 : vector<32x256xf32>
    %48 = arith.addf %30, %47 : vector<32x256xf32>
    %49 = vector.extract_strided_slice %11 {offsets = [0, 112], sizes = [32, 256], strides = [1, 1]} : vector<32x512xf32> to vector<32x256xf32>
    %50 = vector.extract_strided_slice %29 {offsets = [0, 1], sizes = [32, 1], strides = [1, 1]} : vector<32x9xf32> to vector<32x1xf32>
    %51 = vector.broadcast %50 : vector<32x1xf32> to vector<32x256xf32>
    %52 = arith.mulf %49, %51 : vector<32x256xf32>
    %53 = arith.addf %48, %52 : vector<32x256xf32>
    %54 = vector.extract_strided_slice %11 {offsets = [0, 113], sizes = [32, 256], strides = [1, 1]} : vector<32x512xf32> to vector<32x256xf32>
    %c1_i32_18 = arith.constant 1 : i32
    %55 = vector.broadcast %c1_i32_18 : i32 to vector<1x256xi32>
    %56 = arith.addi %28, %55 : vector<1x256xi32>
    %c0_i32_19 = arith.constant 0 : i32
    %57 = vector.broadcast %c0_i32_19 : i32 to vector<1x256xi32>
    %58 = arith.cmpi sge, %56, %57 : vector<1x256xi32>
    %c1_i32_20 = arith.constant 1 : i32
    %59 = vector.broadcast %c1_i32_20 : i32 to vector<1x256xi32>
    %60 = arith.addi %28, %59 : vector<1x256xi32>
    %c16_i32_21 = arith.constant 16 : i32
    %61 = vector.broadcast %c16_i32_21 : i32 to vector<1x256xi32>
    %62 = arith.cmpi slt, %60, %61 : vector<1x256xi32>
    %63 = arith.andi %58, %62 : vector<1x256xi1>
    %cst_22 = arith.constant 0.000000e+00 : f32
    %64 = vector.shape_cast %63 : vector<1x256xi1> to vector<1x256xi1>
    %65 = vector.broadcast %64 : vector<1x256xi1> to vector<32x256xi1>
    %66 = vector.broadcast %cst_22 : f32 to vector<32x256xf32>
    %67 = arith.select %65, %54, %66 : vector<32x256xi1>, vector<32x256xf32>
    %68 = vector.extract_strided_slice %29 {offsets = [0, 2], sizes = [32, 1], strides = [1, 1]} : vector<32x9xf32> to vector<32x1xf32>
    %69 = vector.broadcast %68 : vector<32x1xf32> to vector<32x256xf32>
    %70 = arith.mulf %67, %69 : vector<32x256xf32>
    %71 = arith.addf %53, %70 : vector<32x256xf32>
    %72 = vector.extract_strided_slice %11 {offsets = [0, 127], sizes = [32, 256], strides = [1, 1]} : vector<32x512xf32> to vector<32x256xf32>
    %c-1_i32_23 = arith.constant -1 : i32
    %73 = vector.broadcast %c-1_i32_23 : i32 to vector<1x256xi32>
    %74 = arith.addi %28, %73 : vector<1x256xi32>
    %c0_i32_24 = arith.constant 0 : i32
    %75 = vector.broadcast %c0_i32_24 : i32 to vector<1x256xi32>
    %76 = arith.cmpi sge, %74, %75 : vector<1x256xi32>
    %c-1_i32_25 = arith.constant -1 : i32
    %77 = vector.broadcast %c-1_i32_25 : i32 to vector<1x256xi32>
    %78 = arith.addi %28, %77 : vector<1x256xi32>
    %c16_i32_26 = arith.constant 16 : i32
    %79 = vector.broadcast %c16_i32_26 : i32 to vector<1x256xi32>
    %80 = arith.cmpi slt, %78, %79 : vector<1x256xi32>
    %81 = arith.andi %76, %80 : vector<1x256xi1>
    %cst_27 = arith.constant 0.000000e+00 : f32
    %82 = vector.shape_cast %81 : vector<1x256xi1> to vector<1x256xi1>
    %83 = vector.broadcast %82 : vector<1x256xi1> to vector<32x256xi1>
    %84 = vector.broadcast %cst_27 : f32 to vector<32x256xf32>
    %85 = arith.select %83, %72, %84 : vector<32x256xi1>, vector<32x256xf32>
    %86 = vector.extract_strided_slice %29 {offsets = [0, 3], sizes = [32, 1], strides = [1, 1]} : vector<32x9xf32> to vector<32x1xf32>
    %87 = vector.broadcast %86 : vector<32x1xf32> to vector<32x256xf32>
    %88 = arith.mulf %85, %87 : vector<32x256xf32>
    %89 = arith.addf %71, %88 : vector<32x256xf32>
    %90 = vector.extract_strided_slice %29 {offsets = [0, 4], sizes = [32, 1], strides = [1, 1]} : vector<32x9xf32> to vector<32x1xf32>
    %91 = vector.broadcast %90 : vector<32x1xf32> to vector<32x256xf32>
    %92 = arith.mulf %9, %91 : vector<32x256xf32>
    %93 = arith.addf %89, %92 : vector<32x256xf32>
    %94 = vector.extract_strided_slice %11 {offsets = [0, 129], sizes = [32, 256], strides = [1, 1]} : vector<32x512xf32> to vector<32x256xf32>
    %c1_i32_28 = arith.constant 1 : i32
    %95 = vector.broadcast %c1_i32_28 : i32 to vector<1x256xi32>
    %96 = arith.addi %28, %95 : vector<1x256xi32>
    %c0_i32_29 = arith.constant 0 : i32
    %97 = vector.broadcast %c0_i32_29 : i32 to vector<1x256xi32>
    %98 = arith.cmpi sge, %96, %97 : vector<1x256xi32>
    %c1_i32_30 = arith.constant 1 : i32
    %99 = vector.broadcast %c1_i32_30 : i32 to vector<1x256xi32>
    %100 = arith.addi %28, %99 : vector<1x256xi32>
    %c16_i32_31 = arith.constant 16 : i32
    %101 = vector.broadcast %c16_i32_31 : i32 to vector<1x256xi32>
    %102 = arith.cmpi slt, %100, %101 : vector<1x256xi32>
    %103 = arith.andi %98, %102 : vector<1x256xi1>
    %cst_32 = arith.constant 0.000000e+00 : f32
    %104 = vector.shape_cast %103 : vector<1x256xi1> to vector<1x256xi1>
    %105 = vector.broadcast %104 : vector<1x256xi1> to vector<32x256xi1>
    %106 = vector.broadcast %cst_32 : f32 to vector<32x256xf32>
    %107 = arith.select %105, %94, %106 : vector<32x256xi1>, vector<32x256xf32>
    %108 = vector.extract_strided_slice %29 {offsets = [0, 5], sizes = [32, 1], strides = [1, 1]} : vector<32x9xf32> to vector<32x1xf32>
    %109 = vector.broadcast %108 : vector<32x1xf32> to vector<32x256xf32>
    %110 = arith.mulf %107, %109 : vector<32x256xf32>
    %111 = arith.addf %93, %110 : vector<32x256xf32>
    %112 = vector.extract_strided_slice %11 {offsets = [0, 143], sizes = [32, 256], strides = [1, 1]} : vector<32x512xf32> to vector<32x256xf32>
    %c-1_i32_33 = arith.constant -1 : i32
    %113 = vector.broadcast %c-1_i32_33 : i32 to vector<1x256xi32>
    %114 = arith.addi %28, %113 : vector<1x256xi32>
    %c0_i32_34 = arith.constant 0 : i32
    %115 = vector.broadcast %c0_i32_34 : i32 to vector<1x256xi32>
    %116 = arith.cmpi sge, %114, %115 : vector<1x256xi32>
    %c-1_i32_35 = arith.constant -1 : i32
    %117 = vector.broadcast %c-1_i32_35 : i32 to vector<1x256xi32>
    %118 = arith.addi %28, %117 : vector<1x256xi32>
    %c16_i32_36 = arith.constant 16 : i32
    %119 = vector.broadcast %c16_i32_36 : i32 to vector<1x256xi32>
    %120 = arith.cmpi slt, %118, %119 : vector<1x256xi32>
    %121 = arith.andi %116, %120 : vector<1x256xi1>
    %cst_37 = arith.constant 0.000000e+00 : f32
    %122 = vector.shape_cast %121 : vector<1x256xi1> to vector<1x256xi1>
    %123 = vector.broadcast %122 : vector<1x256xi1> to vector<32x256xi1>
    %124 = vector.broadcast %cst_37 : f32 to vector<32x256xf32>
    %125 = arith.select %123, %112, %124 : vector<32x256xi1>, vector<32x256xf32>
    %126 = vector.extract_strided_slice %29 {offsets = [0, 6], sizes = [32, 1], strides = [1, 1]} : vector<32x9xf32> to vector<32x1xf32>
    %127 = vector.broadcast %126 : vector<32x1xf32> to vector<32x256xf32>
    %128 = arith.mulf %125, %127 : vector<32x256xf32>
    %129 = arith.addf %111, %128 : vector<32x256xf32>
    %130 = vector.extract_strided_slice %11 {offsets = [0, 144], sizes = [32, 256], strides = [1, 1]} : vector<32x512xf32> to vector<32x256xf32>
    %131 = vector.extract_strided_slice %29 {offsets = [0, 7], sizes = [32, 1], strides = [1, 1]} : vector<32x9xf32> to vector<32x1xf32>
    %132 = vector.broadcast %131 : vector<32x1xf32> to vector<32x256xf32>
    %133 = arith.mulf %130, %132 : vector<32x256xf32>
    %134 = arith.addf %129, %133 : vector<32x256xf32>
    %135 = vector.extract_strided_slice %11 {offsets = [0, 145], sizes = [32, 256], strides = [1, 1]} : vector<32x512xf32> to vector<32x256xf32>
    %c1_i32_38 = arith.constant 1 : i32
    %136 = vector.broadcast %c1_i32_38 : i32 to vector<1x256xi32>
    %137 = arith.addi %28, %136 : vector<1x256xi32>
    %c0_i32_39 = arith.constant 0 : i32
    %138 = vector.broadcast %c0_i32_39 : i32 to vector<1x256xi32>
    %139 = arith.cmpi sge, %137, %138 : vector<1x256xi32>
    %c1_i32_40 = arith.constant 1 : i32
    %140 = vector.broadcast %c1_i32_40 : i32 to vector<1x256xi32>
    %141 = arith.addi %28, %140 : vector<1x256xi32>
    %c16_i32_41 = arith.constant 16 : i32
    %142 = vector.broadcast %c16_i32_41 : i32 to vector<1x256xi32>
    %143 = arith.cmpi slt, %141, %142 : vector<1x256xi32>
    %144 = arith.andi %139, %143 : vector<1x256xi1>
    %cst_42 = arith.constant 0.000000e+00 : f32
    %145 = vector.shape_cast %144 : vector<1x256xi1> to vector<1x256xi1>
    %146 = vector.broadcast %145 : vector<1x256xi1> to vector<32x256xi1>
    %147 = vector.broadcast %cst_42 : f32 to vector<32x256xf32>
    %148 = arith.select %146, %135, %147 : vector<32x256xi1>, vector<32x256xf32>
    %149 = vector.extract_strided_slice %29 {offsets = [0, 8], sizes = [32, 1], strides = [1, 1]} : vector<32x9xf32> to vector<32x1xf32>
    %150 = vector.broadcast %149 : vector<32x1xf32> to vector<32x256xf32>
    %151 = arith.mulf %148, %150 : vector<32x256xf32>
    %152 = arith.addf %134, %151 : vector<32x256xf32>
    %c0_43 = arith.constant 0 : index
    %c0_44 = arith.constant 0 : index
    %153 = vector.load %arg5[%c0_43, %c0_44] : memref<32x1xf32, #tpu.memory_space<vmem>>, vector<32x1xf32>
    %154 = vector.broadcast %153 : vector<32x1xf32> to vector<32x256xf32>
    %155 = arith.addf %152, %154 : vector<32x256xf32>
    %cst_45 = arith.constant 0.000000e+00 : f32
    %156 = vector.broadcast %cst_45 : f32 to vector<32x256xf32>
    %157 = arith.maximumf %155, %156 : vector<32x256xf32>
    %cst_46 = arith.constant 6.000000e+00 : f32
    %158 = vector.broadcast %cst_46 : f32 to vector<32x256xf32>
    %159 = arith.minimumf %157, %158 : vector<32x256xf32>
    %160 = vector.extract_strided_slice %159 {offsets = [0, 0], sizes = [16, 256], strides = [1, 1]} : vector<32x256xf32> to vector<16x256xf32>
    %cst_47 = arith.constant dense<0.000000e+00> : vector<16xf32>
    %161 = vector.multi_reduction <add>, %160, %cst_47 [1] : vector<16x256xf32> to vector<16xf32>
    %162 = vector.shape_cast %161 : vector<16xf32> to vector<16x1xf32>
    %cst_48 = arith.constant 2.560000e+02 : f32
    %163 = vector.broadcast %cst_48 : f32 to vector<16x1xf32>
    %164 = arith.divf %162, %163 : vector<16x1xf32>
    %c0_49 = arith.constant 0 : index
    %c0_50 = arith.constant 0 : index
    %165 = vector.load %arg6[%c0_49, %c0_50] : memref<16x4xf32, #tpu.memory_space<vmem>>, vector<16x4xf32>
    %166 = vector.broadcast %164 : vector<16x1xf32> to vector<16x4xf32>
    %167 = arith.mulf %165, %166 : vector<16x4xf32>
    %cst_51 = arith.constant dense<0.000000e+00> : vector<4xf32>
    %168 = vector.multi_reduction <add>, %167, %cst_51 [0] : vector<16x4xf32> to vector<4xf32>
    %169 = vector.shape_cast %168 : vector<4xf32> to vector<1x4xf32>
    %cst_52 = arith.constant 0.000000e+00 : f32
    %170 = vector.broadcast %cst_52 : f32 to vector<1x4xf32>
    %171 = arith.maximumf %169, %170 : vector<1x4xf32>
    %c0_53 = arith.constant 0 : index
    %c0_54 = arith.constant 0 : index
    %172 = vector.load %arg7[%c0_53, %c0_54] : memref<16x4xf32, #tpu.memory_space<vmem>>, vector<16x4xf32>
    %173 = vector.broadcast %171 : vector<1x4xf32> to vector<16x4xf32>
    %174 = arith.mulf %172, %173 : vector<16x4xf32>
    %cst_55 = arith.constant dense<0.000000e+00> : vector<16xf32>
    %175 = vector.multi_reduction <add>, %174, %cst_55 [1] : vector<16x4xf32> to vector<16xf32>
    %176 = vector.shape_cast %175 : vector<16xf32> to vector<16x1xf32>
    %177 = arith.negf %176 : vector<16x1xf32>
    %178 = math.exp %177 : vector<16x1xf32>
    %cst_56 = arith.constant 1.000000e+00 : f32
    %179 = vector.broadcast %cst_56 : f32 to vector<16x1xf32>
    %180 = arith.addf %179, %178 : vector<16x1xf32>
    %181 = arith.divf %179, %180 : vector<16x1xf32>
    %182 = vector.extract_strided_slice %159 {offsets = [16, 0], sizes = [16, 256], strides = [1, 1]} : vector<32x256xf32> to vector<16x256xf32>
    %cst_57 = arith.constant dense<0.000000e+00> : vector<16xf32>
    %183 = vector.multi_reduction <add>, %182, %cst_57 [1] : vector<16x256xf32> to vector<16xf32>
    %184 = vector.shape_cast %183 : vector<16xf32> to vector<16x1xf32>
    %cst_58 = arith.constant 2.560000e+02 : f32
    %185 = vector.broadcast %cst_58 : f32 to vector<16x1xf32>
    %186 = arith.divf %184, %185 : vector<16x1xf32>
    %c0_59 = arith.constant 0 : index
    %c0_60 = arith.constant 0 : index
    %187 = vector.load %arg6[%c0_59, %c0_60] : memref<16x4xf32, #tpu.memory_space<vmem>>, vector<16x4xf32>
    %188 = vector.broadcast %186 : vector<16x1xf32> to vector<16x4xf32>
    %189 = arith.mulf %187, %188 : vector<16x4xf32>
    %cst_61 = arith.constant dense<0.000000e+00> : vector<4xf32>
    %190 = vector.multi_reduction <add>, %189, %cst_61 [0] : vector<16x4xf32> to vector<4xf32>
    %191 = vector.shape_cast %190 : vector<4xf32> to vector<1x4xf32>
    %cst_62 = arith.constant 0.000000e+00 : f32
    %192 = vector.broadcast %cst_62 : f32 to vector<1x4xf32>
    %193 = arith.maximumf %191, %192 : vector<1x4xf32>
    %c0_63 = arith.constant 0 : index
    %c0_64 = arith.constant 0 : index
    %194 = vector.load %arg7[%c0_63, %c0_64] : memref<16x4xf32, #tpu.memory_space<vmem>>, vector<16x4xf32>
    %195 = vector.broadcast %193 : vector<1x4xf32> to vector<16x4xf32>
    %196 = arith.mulf %194, %195 : vector<16x4xf32>
    %cst_65 = arith.constant dense<0.000000e+00> : vector<16xf32>
    %197 = vector.multi_reduction <add>, %196, %cst_65 [1] : vector<16x4xf32> to vector<16xf32>
    %198 = vector.shape_cast %197 : vector<16xf32> to vector<16x1xf32>
    %199 = arith.negf %198 : vector<16x1xf32>
    %200 = math.exp %199 : vector<16x1xf32>
    %cst_66 = arith.constant 1.000000e+00 : f32
    %201 = vector.broadcast %cst_66 : f32 to vector<16x1xf32>
    %202 = arith.addf %201, %200 : vector<16x1xf32>
    %203 = arith.divf %201, %202 : vector<16x1xf32>
    %204 = tpu.concatenate %181, %203 in 0 : vector<16x1xf32>, vector<16x1xf32> -> vector<32x1xf32>
    %205 = vector.broadcast %204 : vector<32x1xf32> to vector<32x256xf32>
    %206 = arith.mulf %159, %205 : vector<32x256xf32>
    %c0_67 = arith.constant 0 : index
    %c0_68 = arith.constant 0 : index
    %207 = vector.load %arg8[%c0_67, %c0_68] : memref<8x32xf32, #tpu.memory_space<vmem>>, vector<8x32xf32>
    %cst_69 = arith.constant dense<0.000000e+00> : vector<8x256xf32>
    %208 = tpu.matmul %207, %206, %cst_69 {dimension_numbers = #tpu.dot_dimension_numbers<[1], [0], [0], [1], [0, 0, 1, 1], [], []>} : vector<8x32xf32>, vector<32x256xf32>, vector<8x256xf32> -> vector<8x256xf32>
    %c0_70 = arith.constant 0 : index
    %c0_71 = arith.constant 0 : index
    %209 = vector.load %arg9[%c0_70, %c0_71] : memref<8x1xf32, #tpu.memory_space<vmem>>, vector<8x1xf32>
    %210 = vector.broadcast %209 : vector<8x1xf32> to vector<8x256xf32>
    %211 = arith.addf %208, %210 : vector<8x256xf32>
    %212 = arith.addf %211, %0 : vector<8x256xf32>
    %c0_72 = arith.constant 0 : index
    %c0_73 = arith.constant 0 : index
    %213 = vector.load %arg10[%c0_72, %c0_73] : memref<8x256xf32, #tpu.memory_space<vmem>>, vector<8x256xf32>
    tpu.vector_store %arg10[%c0_72, %c0_73], %212 {strides = array<i32>} : memref<8x256xf32, #tpu.memory_space<vmem>>, vector<8x256xf32>,
    return
  }
  func.func @transform_0(%arg0: i32) -> (i32, i32) {
    %c0_i32 = arith.constant 0 : i32
    %c0_i32_0 = arith.constant 0 : i32
    %c0_i32_1 = arith.constant 0 : i32
    return %c0_i32, %c0_i32_0 : i32, i32
  }
  func.func @transform_1(%arg0: i32) -> (i32, i32) {
    %c0_i32 = arith.constant 0 : i32
    %c0_i32_0 = arith.constant 0 : i32
    %c0_i32_1 = arith.constant 0 : i32
    return %c0_i32, %c0_i32_0 : i32, i32
  }
  func.func @transform_2(%arg0: i32) -> (i32, i32) {
    %c0_i32 = arith.constant 0 : i32
    %c0_i32_0 = arith.constant 0 : i32
    %c0_i32_1 = arith.constant 0 : i32
    return %c0_i32, %c0_i32_0 : i32, i32
  }
  func.func @transform_3(%arg0: i32) -> (i32, i32) {
    %c0_i32 = arith.constant 0 : i32
    %c0_i32_0 = arith.constant 0 : i32
    %c0_i32_1 = arith.constant 0 : i32
    return %c0_i32, %c0_i32_0 : i32, i32
  }
  func.func @transform_4(%arg0: i32) -> (i32, i32) {
    %c0_i32 = arith.constant 0 : i32
    %c0_i32_0 = arith.constant 0 : i32
    %c0_i32_1 = arith.constant 0 : i32
    return %c0_i32, %c0_i32_0 : i32, i32
  }
  func.func @transform_5(%arg0: i32) -> (i32, i32) {
    %c0_i32 = arith.constant 0 : i32
    %c0_i32_0 = arith.constant 0 : i32
    %c0_i32_1 = arith.constant 0 : i32
    return %c0_i32, %c0_i32_0 : i32, i32
  }
  func.func @transform_6(%arg0: i32) -> (i32, i32) {
    %c0_i32 = arith.constant 0 : i32
    %c0_i32_0 = arith.constant 0 : i32
    %c0_i32_1 = arith.constant 0 : i32
    return %c0_i32, %c0_i32_0 : i32, i32
  }
  func.func @transform_7(%arg0: i32) -> (i32, i32) {
    %c0_i32 = arith.constant 0 : i32
    %c0_i32_0 = arith.constant 0 : i32
    %c0_i32_1 = arith.constant 0 : i32
    return %c0_i32, %c0_i32_0 : i32, i32
  }
  func.func @transform_8(%arg0: i32) -> (i32, i32) {
    %c0_i32 = arith.constant 0 : i32
    %c0_i32_0 = arith.constant 0 : i32
    %c0_i32_1 = arith.constant 0 : i32
    return %c0_i32, %c0_i32_0 : i32, i32
  }
  func.func @transform_9(%arg0: i32) -> (i32, i32) {
    %c0_i32 = arith.constant 0 : i32
    %c0_i32_0 = arith.constant 0 : i32
    %c0_i32_1 = arith.constant 0 : i32
    return %c0_i32, %c0_i32_0 : i32, i32
  }
}

</mosaic_0001>

<bundles_post_ra>
// kernel: mbconv_forward.1
= control target key start
LH: loop header
LB: loop body
LE: loop exit
PB: predicated region body
PF: predicated region fallthrough
CT: control target
= control target key end

     0   :  { %v1239_v2 = vmov 0.0   ;;  %vm62_vm0 = vcmask 64512   ;;  %v1240_v4 = vmov 1   ;;  %v1241_v5 = vmov 0   ;;  %s1251_s12 = smov 113   ;;  %s1252_s15 = smov 15   ;;  %s2141_s0 = inlined_call_operand.vmem [shape: f32[8,256], index: 0, kind: input, shape index: {}]   ;;  %s2142_s1 = inlined_call_operand.vmem [shape: f32[32,8], index: 1, kind: input, shape index: {}]   ;;  %s2143_s3 = inlined_call_operand.vmem [shape: f32[32,9], index: 3, kind: input, shape index: {}]   ;;  %s2144_s2 = inlined_call_operand.vmem [shape: f32[32,1], index: 2, kind: input, shape index: {}]   ;;  %s2145_s4 = inlined_call_operand.vmem [shape: f32[32,1], index: 4, kind: input, shape index: {}]   ;;  %s2146_s5 = inlined_call_operand.vmem [shape: f32[16,4], index: 5, kind: input, shape index: {}]   ;;  %s2147_s6 = inlined_call_operand.vmem [shape: f32[16,4], index: 6, kind: input, shape index: {}]   ;;  %s2148_s8 = inlined_call_operand.vmem [shape: f32[8,1], index: 8, kind: input, shape index: {}]   ;;  %s2149_s7 = inlined_call_operand.vmem [shape: f32[8,32], index: 7, kind: input, shape index: {}]   ;;  %s2150_s9 = inlined_call_operand.vmem [shape: f32[8,256], index: 9, kind: output, shape index: {}]  }
   0x1   :  { %v33_v0 = vld [vmem:[%s2141_s0 + $0x8] sm:$0xff]  ;;  %v32_v1 = vld [vmem:[%s2141_s0] sm:$0xff]  ;;  %139 = vmatprep.mubr.f32.mxu0 %v1239_v2  ;;  %1196 = vset.pattern.permute.xlu0 %v1240_v4  ;;  %v40_v7 = vld [vmem:[%s2144_s2 + $0x10] sm:$0xff]  ;;  %v1242_v13 = vmov 7   ;;  %v1243_v16 = vmov 2   ;;  %v1244_v17 = vmov 3  }
   0x2   :  { %v34_v3 = vld [vmem:[%s2142_s1] sm:$0xff]  ;;  %75 = vmatprep.subr.mxu0 %v33_v0  ;;  %1195 = vset.pattern.permute.xlu1 %v1241_v5  ;;  %v1331_v8 = vld [vmem:[%s2143_s3 + $0x18] sm:$0xff]  ;;  %v35_v9 = vld [vmem:[%s2142_s1 + $0x8] sm:$0xff]  ;;  %v1245_v18 = vmov 4   ;;  %v1247_v19 = vmov 5   ;;  %v1248_v20 = vmov 6  }
   0x3   :  { %v1321_v6 = vld [vmem:[%s2143_s3] sm:$0xff]  ;;  %76 = vmatpush1.msra.mxu0 %v32_v1  ;;  %54 = vperm.xlu1 %1195, %v40_v7   ;;  %v41_v10 = vld [vmem:[%s2144_s2 + $0x18] sm:$0xff]  ;;  %v36_v11 = vld [vmem:[%s2142_s1 + $0x10] sm:$0xff]  ;;  %v1249_v21 = vmov 8   ;;  %s1254_s22 = smov 16   ;;  %s1255_s23 = smov 111  }
   0x4   :  { %312 = vperm.xlu0 %1196, %v1321_v6   ;;  %1160 = vmatmul.mubr.msk.f32.vlgmr.msra.gmra.mrb[0].mxu0 %vm62_vm0, %v34_v3  ;;  %v1350_v12 = vld [vmem:[%s2143_s3 + $0x8] sm:$0xff]  ;;  %v37_v14 = vld [vmem:[%s2142_s1 + $0x18] sm:$0xff]  ;;  %v1362_v15 = vld [vmem:[%s2143_s3 + $0x10] sm:$0xff]  ;;  %s1246_s1 = smov 1   ;;  %s1250_s3 = smov 17   ;;  %vm250_vm1 = vcmask 138240  }
   0x5   :  { %145 = vmatprep.mubr.f32.mxu0 %v1239_v2  ;;  %1145 = vmatprep.mubr.f32.mxu1 %v1239_v2  ;;  %v38_v22 = vld [vmem:[%s2144_s2] sm:$0xff]  ;;  %v39_v23 = vld [vmem:[%s2144_s2 + $0x8] sm:$0xff]  ;;  %s1253_s2 = smov 127   ;;  %s1256_s24 = smov 112   ;;  %vm430_vm2 = vcmask 121856   ;;  %vm505_vm4 = vcmask 7168  }
   0x6   :  { %v909_v24 = vld [vmem:[%s2145_s4 + $0x8] sm:$0xff]  ;;  %v908_v25 = vld [vmem:[%s2145_s4] sm:$0xff]  ;;  %vm375_vm6 = vcmask 130048   ;;  %vm612_vm7 = vcmask 1039360   ;;  %vm687_vm8 = vcmask 924672   ;;  %vm851_vm11 = vcmask 908288  }
   0x7   :  { %59 = vperm.xlu1 %1195, %v41_v10   ;;  %vm808_vm12 = vcmask 916480   ;;  %vm969_vm13 = vcmask 31744   ;;  %vm1077_vm14 = vcmask 261120  }
   0x8   :  { %324 = vperm.xlu0 %1196, %v1331_v8   ;;  %1161 = vmatmul.mubr.msk.f32.gmra.mrb[2].mxu0 %vm62_vm0, %v35_v9 }
   0x9   :  { %151 = vmatprep.mubr.f32.mxu0 %v1239_v2 }
   0xb   :  { %1197 = vset.pattern.permute.xlu1 %v1240_v4 }
   0xc   :  { %1199 = vset.pattern.permute.xlu0 %v1242_v13  ;;  %1162 = vmatmul.mubr.msk.f32.gmra.mrb[4].mxu0 %vm62_vm0, %v36_v11 }
   0xd   :  { %749 = vperm.xlu0 %1199, %v1350_v12   ;;  %157 = vmatprep.mubr.f32.mxu0 %v1239_v2 }
   0xe   :  { %316 = vperm.xlu1 %1197, %v1350_v12  }
  0x10   :  { %1163 = vmatmul.mubr.msk.f32.gmra.mrb[6].mxu0 %vm62_vm0, %v37_v14 }
  0x11   :  { %1202 = vset.pattern.permute.xlu0 %v1243_v16 }
  0x12   :  { %460 = vperm.xlu0 %1202, %v1350_v12   ;;  %320 = vperm.xlu1 %1197, %v1362_v15  }
  0x16   :  { %464 = vperm.xlu0 %1202, %v1362_v15   ;;  %1198 = vset.pattern.permute.xlu1 %v1242_v13 }
  0x17   :  { %745 = vperm.xlu1 %1198, %v1321_v6  }
  0x1a   :  { %1205 = vset.pattern.permute.xlu0 %v1244_v17 }
  0x1b   :  { %531 = vperm.xlu0 %1205, %v1321_v6   ;;  %753 = vperm.xlu1 %1198, %v1362_v15  }
  0x1f   :  { %543 = vperm.xlu0 %1205, %v1331_v8   ;;  %757 = vperm.xlu1 %1198, %v1331_v8  }
  0x23   :  { %1209 = vset.pattern.permute.xlu0 %v1245_v18  ;;  %1200 = vset.pattern.permute.xlu1 %v1241_v5 }
  0x24   :  { %567 = vperm.xlu0 %1209, %v1350_v12   ;;  %282 = vperm.xlu1 %1200, %v1350_v12  }
  0x28   :  { %487 = vrot.lane.b32.xlu0 %v1239_v2, %s1246_s1  ;;  %1201 = vset.pattern.permute.xlu1 %v1243_v16 }
  0x29   :  { %456 = vperm.xlu1 %1201, %v1321_v6  }
  0x2c   :  { %575 = vperm.xlu0 %1209, %v1331_v8  }
  0x2d   :  { %1203 = vset.pattern.permute.xlu1 %v1241_v5 }
  0x2e   :  { %287 = vperm.xlu1 %1203, %v1362_v15  }
  0x30   :  { %1213 = vset.pattern.permute.xlu0 %v1247_v19 }
  0x31   :  { %646 = vperm.xlu0 %1213, %v1362_v15  }
  0x32   :  { %292 = vperm.xlu1 %1203, %v1331_v8  }
  0x35   :  { %1215 = vset.pattern.permute.xlu0 %v1248_v20 }
  0x36   :  { %721 = vperm.xlu0 %1215, %v1362_v15   ;;  %1204 = vset.pattern.permute.xlu1 %v1244_v17 }
  0x37   :  { %535 = vperm.xlu1 %1204, %v1350_v12  }
  0x3a   :  { %1218 = vset.pattern.permute.xlu0 %v1249_v21 }
  0x3b   :  { %881 = vperm.xlu0 %1218, %v1350_v12   ;;  %232 = vrot.lane.b32.xlu1 %v1239_v2, %s1250_s3 }
  0x3c   :  { %1206 = vset.pattern.permute.xlu1 %v1243_v16 }
  0x3f   :  { %673 = vrot.lane.b32.xlu0 %v1239_v2, %s1251_s12  ;;  %468 = vperm.xlu1 %1206, %v1331_v8  }
  0x43   :  { %889 = vperm.xlu0 %1218, %v1331_v8   ;;  %1207 = vset.pattern.permute.xlu1 %v1245_v18 }
  0x44   :  { %563 = vperm.xlu1 %1207, %v1321_v6  }
  0x47   :  { %1219 = vset.pattern.permute.xlu0 %v1241_v5 }
  0x48   :  { %44 = vperm.xlu0 %1219, %v38_v22   ;;  %412 = vrot.lane.b32.xlu1 %v1239_v2, %s1252_s15 }
  0x49   :  { %1208 = vset.pattern.permute.xlu1 %v1244_v17 }
  0x4c   :  { %49 = vperm.xlu0 %1219, %v39_v23   ;;  %539 = vperm.xlu1 %1208, %v1362_v15  }
  0x50   :  { %277 = vperm.xlu0 %1219, %v1321_v6   ;;  %1210 = vset.pattern.permute.xlu1 %v1247_v19 }
  0x51   :  { %638 = vperm.xlu1 %1210, %v1321_v6  }
  0x54   :  { %919 = vperm.xlu0 %1219, %v909_v24  }
  0x55   :  { %642 = vperm.xlu1 %1210, %v1350_v12  }
  0x59   :  { %1211 = vset.pattern.permute.xlu1 %v1245_v18 }
  0x5a   :  { %571 = vperm.xlu1 %1211, %v1362_v15  }
  0x5e   :  { %1212 = vset.pattern.permute.xlu1 %v1248_v20 }
  0x5f   :  { %713 = vperm.xlu1 %1212, %v1321_v6  }
  0x63   :  { %717 = vperm.xlu1 %1212, %v1350_v12  }
  0x67   :  { %1214 = vset.pattern.permute.xlu1 %v1247_v19 }
  0x68   :  { %650 = vperm.xlu1 %1214, %v1331_v8  }
  0x6c   :  { %598 = vrot.lane.b32.xlu1 %v1239_v2, %s1253_s2 }
  0x6d   :  { %1216 = vset.pattern.permute.xlu1 %v1248_v20 }
  0x70   :  { %725 = vperm.xlu1 %1216, %v1331_v8  }
  0x74   :  { %1217 = vset.pattern.permute.xlu1 %v1249_v21 }
  0x75   :  { %877 = vperm.xlu1 %1217, %v1321_v6  }
  0x79   :  { %885 = vperm.xlu1 %1217, %v1362_v15  }
  0x7d   :  { %1220 = vset.pattern.permute.xlu1 %v1241_v5 }
  0x7e   :  { %914 = vperm.xlu1 %1220, %v908_v25  }
  0x82   :  { %v1426_v28 = vpop.permute.xlu1 %54 }
  0x83   :  { %v1423_v26 = vpop.permute.xlu0 %312 }
  0x84   :  { %v327_v27 = vmul.f32 0.0, %v1423_v26 }
  0x86   :  { %351 = vrot.lane.b32.xlu1 %v327_v27, %s1254_s22  ;;  %v1432_v31 = vpop.permute.xlu1 %59 }
  0x87   :  { %v1429_v29 = vpop.permute.xlu0 %324 }
  0x88   :  { %v336_v30 = vmul.f32 0.0, %v1429_v29 }
  0x8a   :  { %369 = vrot.lane.b32.xlu1 %v336_v30, %s1254_s22 }
  0x8c   :  { %v1435_v32 = vpop.permute.xlu0 %749 }
  0x8d   :  { %v1437_v33 = vpop.permute.xlu1 %316 }
  0x8e   :  { %v330_v34 = vmul.f32 0.0, %v1437_v33 }
  0x90   :  { %357 = vrot.lane.b32.xlu0 %v330_v34, %s1254_s22 }
  0x91   :  { %v1441_v35 = vpop.permute.xlu1 %320  ;;  %v1444_v37 = vpop.permute.xlu0 %460 }
  0x92   :  { %v333_v36 = vmul.f32 0.0, %v1441_v35 }
  0x94   :  { %363 = vrot.lane.b32.xlu0 %v333_v36, %s1254_s22 }
  0x95   :  { %v1452_v40 = vpop.permute.xlu0 %464 }
  0x96   :  { %v1447_v38 = vpop.permute.xlu1 %745 }
  0x97   :  { %v762_v39 = vmul.f32 0.0, %v1447_v38 }
  0x98   :  { %837 = vrot.lane.b32.xlu0 %v1239_v2, %s1255_s23 }
  0x99   :  { %788 = vrot.lane.b32.xlu1 %v762_v39, %s1256_s24 }
  0x9a   :  { %v1455_v41 = vpop.permute.xlu0 %531  ;;  %v1465_v46 = vpop.permute.xlu1 %753 }
  0x9e   :  { %v1457_v42 = vpop.permute.xlu0 %543  ;;  %v1469_v48 = vpop.permute.xlu1 %757 }
  0x9f   :  { %2165 = vst [vmem:[#allocation2_spill] sm:$0xff] %v1457_v42  ;;  %v768_v42 = vmul.f32 0.0, %v1465_v46 }
  0xa3   :  { %v1459_v43 = vpop.permute.xlu0 %567  ;;  %v1473_v50 = vpop.permute.xlu1 %282 }
  0xa7   :  { %v1461_v44 = vpop.permute.xlu0 %487 }
  0xa8   :  { %v1477_v52 = vpop.permute.xlu1 %456 }
  0xab   :  { %v1463_v45 = vpop.permute.xlu0 %575 }
  0xac   :  { %2166 = vst [vmem:[#allocation3_spill] sm:$0xff] %v1463_v45 }
  0xad   :  { %v1481_v54 = vpop.permute.xlu1 %287 }
  0xb0   :  { %v1467_v47 = vpop.permute.xlu0 %646 }
  0xb1   :  { %2167 = vst [vmem:[#allocation4_spill] sm:$0xff] %v1467_v47  ;;  %v1485_v56 = vpop.permute.xlu1 %292 }
  0xb2   :  { %2171 = vst [vmem:[#allocation8_spill] sm:$0xff] %v1485_v56 }
  0xb5   :  { %v1471_v49 = vpop.permute.xlu0 %721 }
  0xb6   :  { %2168 = vst [vmem:[#allocation5_spill] sm:$0xff] %v1471_v49  ;;  %v1487_v61 = vpop.permute.xlu1 %535 }
  0xba   :  { %v1475_v51 = vpop.permute.xlu0 %881  ;;  %v1495_v4 = vpop.permute.xlu1 %232 }
  0xbb   :  { %2169 = vst [vmem:[#allocation6_spill] sm:$0xff] %v1475_v51 }
  0xbe   :  { %v1479_v53 = vpop.permute.xlu0 %673  ;;  %v1505_v10 = vpop.permute.xlu1 %468 }
  0xbf   :  { %2172 = vst [vmem:[#allocation9_spill] sm:$0xff] %v1505_v10 }
  0xc2   :  { %v1483_v55 = vpop.permute.xlu0 %889 }
  0xc3   :  { %2170 = vst [vmem:[#allocation7_spill] sm:$0xff] %v1483_v55  ;;  %v1515_v11 = vpop.permute.xlu1 %563 }
  0xc7   :  { %v45_v57 = vpop.permute.xlu0 %44  ;;  %v1523_v15 = vpop.permute.xlu1 %412 }
  0xcb   :  { %v50_v12 = vpop.permute.xlu0 %49  ;;  %v1533_v18 = vpop.permute.xlu1 %539 }
  0xd0   :  { %v1544_v24 = vpop.permute.xlu1 %638 }
  0xd4   :  { %v1555_v27 = vpop.permute.xlu1 %642 }
  0xd7   :  { %v141_v58 = vpop.f32.mrb[0].mxu0 }
  0xd8   :  { %v142_v59 = vadd.f32 %v141_v58, %v45_v57  ;;  %v143_v60 = vpop.f32.mrb[1].mxu0 }
  0xd9   :  { %v144_v1 = vadd.f32 %v143_v60, %v45_v57 }
  0xda   :  { %v164_v62 = vmax.f32 %v142_v59, 0.0 }
  0xdb   :  { %v147_v63 = vpop.f32.mrb[2].mxu0  ;;  %v165_v5 = vmax.f32 %v144_v1, 0.0 }
  0xdc   :  { %v1489_v0 = vmin.f32 %v164_v62, 6.0  ;;  %v149_v2 = vpop.f32.mrb[3].mxu0  ;;  %v148_v13 = vadd.f32 %v147_v63, %v50_v12 }
  0xdd   :  { %v1501_v8 = vmin.f32 %v165_v5, 6.0  ;;  %v150_v20 = vadd.f32 %v149_v2, %v50_v12 }
  0xde   :  { %414 = vrot.lane.b32.xlu1 %v1489_v0, %s1252_s15  ;;  %234 = vrot.lane.b32.xlu0 %v1489_v0, %s1250_s3  ;;  %v328_v14 = vmul.f32 %v1423_v26, %v1489_v0  ;;  %v166_v16 = vmax.f32 %v148_v13, 0.0  ;;  %v760_v21 = vmul.f32 %v1447_v38, %v1489_v0 }
  0xdf   :  { %v153_v3 = vpop.f32.mrb[4].mxu0  ;;  %v761_v17 = vmul.f32 %v1447_v38, %v1501_v8  ;;  %v167_v22 = vmax.f32 %v150_v20, 0.0  ;;  %v329_v23 = vmul.f32 %v1423_v26, %v1501_v8  ;;  %v1561_v26 = vpop.permute.xlu1 %571 }
  0xe0   :  { %v155_v6 = vpop.f32.mrb[5].mxu0  ;;  %v1535_v19 = vmin.f32 %v166_v16, 6.0  ;;  %v154_v30 = vadd.f32 %v153_v3, %v1426_v28 }
  0xe1   :  { %v1549_v25 = vmin.f32 %v167_v22, 6.0  ;;  %v156_v57 = vadd.f32 %v155_v6, %v1426_v28 }
  0xe2   :  { %489 = vrot.lane.b32.xlu1 %v1489_v0, %s1246_s1  ;;  %833 = vrot.lane.b32.xlu0 %v1489_v0, %s1255_s23  ;;  %v168_v34 = vmax.f32 %v154_v30, 0.0  ;;  %v331_v60 = vmul.f32 %v1437_v33, %v1535_v19  ;;  %v763_v22 = vmul.f32 %v1435_v32, %v1535_v19 }
  0xe3   :  { %v159_v7 = vpop.f32.mrb[6].mxu0  ;;  %v1572_v36 = vpop.permute.xlu1 %713  ;;  %v332_v38 = vmul.f32 %v1437_v33, %v1549_v25  ;;  %v169_v59 = vmax.f32 %v156_v57, 0.0 }
  0xe4   :  { %v1503_v9 = vpop.f32.mrb[7].mxu0  ;;  %v1579_v39 = vmin.f32 %v168_v34, 6.0  ;;  %v160_v63 = vadd.f32 %v159_v7, %v1432_v31 }
  0xe5   :  { %v1593_v62 = vmin.f32 %v169_v59, 6.0  ;;  %v162_v6 = vadd.f32 %v1503_v9, %v1432_v31  ;;  %v1639_v9 = vpop.permute.xlu0 %277 }
  0xe6   :  { %594 = vrot.lane.b32.xlu1 %v1489_v0, %s1253_s2  ;;  %416 = vrot.lane.b32.xlu0 %v1501_v8, %s1252_s15  ;;  %v170_v33 = vmax.f32 %v160_v63, 0.0  ;;  %v334_v31 = vmul.f32 %v1441_v35, %v1579_v39  ;;  %v180_v63 = vlaneseq  ;;  %v766_v45 = vmul.f32 %v1465_v46, %v1579_v39 }
  0xe7   :  { %v1582_v58 = vpop.permute.xlu1 %717  ;;  %2173 = vst [vmem:[#allocation10_spill] sm:$0xff] %v1593_v62  ;;  %v335_v2 = vmul.f32 %v1441_v35, %v1593_v62  ;;  %v171_v12 = vmax.f32 %v162_v6, 0.0  ;;  %v764_v6 = vmul.f32 %v1435_v32, %v1549_v25 }
  0xe8   :  { %v1613_v3 = vmin.f32 %v170_v33, 6.0 }
  0xe9   :  { %v1633_v13 = vmin.f32 %v171_v12, 6.0  ;;  %v181_v12 = vand.u32 127, %v180_v63 }
  0xea   :  { %669 = vrot.lane.b32.xlu1 %v1489_v0, %s1251_s12  ;;  %491 = vrot.lane.b32.xlu0 %v1501_v8, %s1246_s1  ;;  %2175 = vst [vmem:[#allocation12_spill] sm:$0xff] %v1613_v3  ;;  %v337_v35 = vmul.f32 %v1429_v29, %v1613_v3 }
  0xeb   :  { %v1595_v28 = vpop.permute.xlu1 %650 }
  0xec   :  { %2174 = vst [vmem:[#allocation11_spill] sm:$0xff] %v1595_v28 }
  0xee   :  { %236 = vrot.lane.b32.xlu1 %v1501_v8, %s1250_s3  ;;  %596 = vrot.lane.b32.xlu0 %v1501_v8, %s1253_s2 }
  0xef   :  { %v1602_v1 = vpop.permute.xlu1 %598 }
  0xf2   :  { %671 = vrot.lane.b32.xlu1 %v1501_v8, %s1251_s12  ;;  %353 = vrot.lane.b32.xlu0 %v328_v14, %s1254_s22 }
  0xf3   :  { %v1615_v5 = vpop.permute.xlu1 %725 }
  0xf4   :  { %2176 = vst [vmem:[#allocation13_spill] sm:$0xff] %v1615_v5 }
  0xf6   :  { %835 = vrot.lane.b32.xlu1 %v1501_v8, %s1255_s23  ;;  %786 = vrot.lane.b32.xlu0 %v761_v17, %s1256_s24  ;;  %v1650_v17 = vpop.permute.xlu0 %919 }
  0xf7   :  { %v1623_v7 = vpop.permute.xlu1 %877  ;;  %2178 = vst [vmem:[#allocation15_spill] sm:$0xff] %v1650_v17 }
  0xfa   :  { %784 = vrot.lane.b32.xlu1 %v760_v21, %s1256_s24  ;;  %238 = vrot.lane.b32.xlu0 %v1535_v19, %s1250_s3 }
  0xfb   :  { %v1635_v14 = vpop.permute.xlu1 %885 }
  0xfc   :  { %2177 = vst [vmem:[#allocation14_spill] sm:$0xff] %v1635_v14 }
  0xfe   :  { %355 = vrot.lane.b32.xlu1 %v329_v23, %s1254_s22  ;;  %600 = vrot.lane.b32.xlu0 %v1535_v19, %s1253_s2  ;;  %v765_v23 = vmul.f32 0.0, %v1435_v32 }
  0xff   :  { %v1644_v16 = vpop.permute.xlu1 %914 }
 0x102   :  { %418 = vrot.lane.b32.xlu1 %v1535_v19, %s1252_s15  ;;  %420 = vrot.lane.b32.xlu0 %v1549_v25, %s1252_s15  ;;  %v1659_v21 = vpop.permute.xlu0 %357 }
 0x103   :  { %v1657_v20 = vpop.permute.xlu1 %351 }
 0x106   :  { %493 = vrot.lane.b32.xlu1 %v1535_v19, %s1246_s1  ;;  %495 = vrot.lane.b32.xlu0 %v1549_v25, %s1246_s1  ;;  %v1669_v34 = vpop.permute.xlu0 %363 }
 0x107   :  { %v1667_v30 = vpop.permute.xlu1 %369 }
 0x108   :  { %2179 = vst [vmem:[#allocation16_spill] sm:$0xff] %v1667_v30 }
 0x10a   :  { %675 = vrot.lane.b32.xlu1 %v1535_v19, %s1251_s12  ;;  %677 = vrot.lane.b32.xlu0 %v1549_v25, %s1251_s12  ;;  %v1681_v59 = vpop.permute.xlu0 %837 }
 0x10b   :  { %v1679_v57 = vpop.permute.xlu1 %788 }
 0x10e   :  { %839 = vrot.lane.b32.xlu1 %v1535_v19, %s1255_s23  ;;  %841 = vrot.lane.b32.xlu0 %v1549_v25, %s1255_s23 }
 0x112   :  { %240 = vrot.lane.b32.xlu1 %v1549_v25, %s1250_s3  ;;  %361 = vrot.lane.b32.xlu0 %v332_v38, %s1254_s22  ;;  %v911_v38 = vld [vmem:[%s2145_s4 + $0x18] sm:$0xff] }
 0x116   :  { %602 = vrot.lane.b32.xlu1 %v1549_v25, %s1253_s2  ;;  %242 = vrot.lane.b32.xlu0 %v1579_v39, %s1250_s3 }
 0x11a   :  { %359 = vrot.lane.b32.xlu1 %v331_v60, %s1254_s22  ;;  %422 = vrot.lane.b32.xlu0 %v1579_v39, %s1252_s15  ;;  %v338_v60 = vmul.f32 %v1429_v29, %v1633_v13  ;;  %v910_v29 = vld [vmem:[%s2145_s4 + $0x10] sm:$0xff] }
 0x11e   :  { %497 = vrot.lane.b32.xlu1 %v1579_v39, %s1246_s1  ;;  %499 = vrot.lane.b32.xlu0 %v1593_v62, %s1246_s1 }
 0x122   :  { %604 = vrot.lane.b32.xlu1 %v1579_v39, %s1253_s2  ;;  %606 = vrot.lane.b32.xlu0 %v1593_v62, %s1253_s2 }
 0x126   :  { %679 = vrot.lane.b32.xlu1 %v1579_v39, %s1251_s12  ;;  %367 = vrot.lane.b32.xlu0 %v335_v2, %s1254_s22 }
 0x12a   :  { %244 = vrot.lane.b32.xlu1 %v1593_v62, %s1250_s3  ;;  %246 = vrot.lane.b32.xlu0 %v1613_v3, %s1250_s3 }
 0x12e   :  { %424 = vrot.lane.b32.xlu1 %v1593_v62, %s1252_s15  ;;  %426 = vrot.lane.b32.xlu0 %v1613_v3, %s1252_s15 }
 0x132   :  { %681 = vrot.lane.b32.xlu1 %v1593_v62, %s1251_s12  ;;  %683 = vrot.lane.b32.xlu0 %v1613_v3, %s1251_s12 }
 0x136   :  { %365 = vrot.lane.b32.xlu1 %v334_v31, %s1254_s22  ;;  %503 = vrot.lane.b32.xlu0 %v1633_v13, %s1246_s1 }
 0x13a   :  { %501 = vrot.lane.b32.xlu1 %v1613_v3, %s1246_s1  ;;  %610 = vrot.lane.b32.xlu0 %v1633_v13, %s1253_s2 }
 0x13e   :  { %608 = vrot.lane.b32.xlu1 %v1613_v3, %s1253_s2  ;;  %371 = vrot.lane.b32.xlu0 %v337_v35, %s1254_s22 }
 0x142   :  { %248 = vrot.lane.b32.xlu1 %v1633_v13, %s1250_s3  ;;  %790 = vrot.lane.b32.xlu0 %v763_v22, %s1256_s24  ;;  %v767_v22 = vmul.f32 %v1465_v46, %v1593_v62 }
 0x146   :  { %428 = vrot.lane.b32.xlu1 %v1633_v13, %s1252_s15  ;;  %794 = vrot.lane.b32.xlu0 %v765_v23, %s1256_s24  ;;  %v187_v23 = vand.u32 15, %v181_v12 }
 0x148   :  { %v1707_v63 = vadd.s32 4294967295, %v187_v23  ;;  %v1713_v55 = vadd.s32 1, %v187_v23 }
 0x14a   :  { %685 = vrot.lane.b32.xlu1 %v1633_v13, %s1251_s12  ;;  %929 = vperm.xlu0 %1219, %v911_v38   ;;  %vm213_vm3 = vcmp.ge.s32.totalorder %v1707_v63, 0  ;;  %vm404_vm5 = vcmp.lt.s32.totalorder %v1713_v55, 16 }
 0x14e   :  { %373 = vrot.lane.b32.xlu1 %v338_v60, %s1254_s22  ;;  %845 = vrot.lane.b32.xlu0 %v1593_v62, %s1255_s23  ;;  %v769_v60 = vmul.f32 %v1469_v48, %v1613_v3 }
 0x150   :  { %v1688_v33 = vpop.permute.xlu1 %414  ;;  %v235_v2 = vpop.permute.xlu0 %234 }
 0x151   :  { %v431_v23 = vsel %vm430_vm2, %v1523_v15, %v1688_v33 }
 0x152   :  { %792 = vrot.lane.b32.xlu1 %v764_v6, %s1256_s24  ;;  %849 = vrot.lane.b32.xlu0 %v1633_v13, %s1255_s23  ;;  %v771_v6 = vmul.f32 0.0, %v1469_v48 }
 0x154   :  { %v1698_v31 = vpop.permute.xlu1 %489  ;;  %v1700_v35 = vpop.permute.xlu0 %833 }
 0x156   :  { %924 = vperm.xlu1 %1220, %v910_v29   ;;  %798 = vrot.lane.b32.xlu0 %v767_v22, %s1256_s24  ;;  %v251_v22 = vsel %vm250_vm1, %v1495_v4, %v235_v2 }
 0x157   :  { %v267_v62 = vsel %vm213_vm3, %v251_v22, 0.0 }
 0x158   :  { %v595_v32 = vpop.permute.xlu1 %594  ;;  %v417_v38 = vpop.permute.xlu0 %416  ;;  %v295_v10 = vmul.f32 %v1639_v9, %v267_v62 }
 0x15a   :  { %843 = vrot.lane.b32.xlu1 %v1579_v39, %s1255_s23  ;;  %802 = vrot.lane.b32.xlu0 %v769_v60, %s1256_s24  ;;  %v182_v60 = vadd.s32 128, %v181_v12  ;;  %v447_v12 = vsel %vm404_vm5, %v431_v23, 0.0 }
 0x15b   :  { %v471_v51 = vmul.f32 %v1477_v52, %v447_v12 }
 0x15c   :  { %v670_v29 = vpop.permute.xlu1 %669  ;;  %v492_v5 = vpop.permute.xlu0 %491 }
 0x15e   :  { %847 = vrot.lane.b32.xlu1 %v1613_v3, %s1255_s23  ;;  %806 = vrot.lane.b32.xlu0 %v771_v6, %s1256_s24  ;;  %v506_v6 = vsel %vm505_vm4, %v1461_v44, %v1698_v31  ;;  %v194_v3 = vand.u32 15, %v182_v60 }
 0x15f   :  { %v522_v22 = vsel %vm213_vm3, %v506_v6, 0.0  ;;  %v770_v6 = vmul.f32 %v1469_v48, %v1633_v13 }
 0x160   :  { %v237_v14 = vpop.permute.xlu1 %236  ;;  %v597_v28 = vpop.permute.xlu0 %596  ;;  %v1743_v49 = vadd.s32 1, %v194_v3  ;;  %v546_v46 = vmul.f32 %v1455_v41, %v522_v22  ;;  %v1746_v60 = vadd.s32 4294967295, %v194_v3  ;;  %v578_v3 = vmul.f32 %v1515_v11, %v1489_v0 }
 0x161   :  { %v613_v12 = vsel %vm612_vm7, %v595_v32, %v597_v28 }
 0x162   :  { %796 = vrot.lane.b32.xlu1 %v766_v45, %s1256_s24  ;;  %vm405_vm9 = vcmp.lt.s32.totalorder %v1743_v49, 16  ;;  %vm214_vm10 = vcmp.ge.s32.totalorder %v1746_v60, 0 }
 0x164   :  { %v672_v56 = vpop.permute.xlu1 %671  ;;  %v354_v30 = vpop.permute.xlu0 %353 }
 0x165   :  { %v376_v17 = vsel %vm375_vm6, %v1657_v20, %v354_v30  ;;  %v252_v20 = vsel %vm250_vm1, %v235_v2, %v237_v14  ;;  %v507_v2 = vsel %vm505_vm4, %v1698_v31, %v492_v5  ;;  %v688_v32 = vsel %vm687_vm8, %v670_v29, %v672_v56 }
 0x166   :  { %v392_v45 = vadd.f32 %v376_v17, %v295_v10  ;;  %800 = vrot.lane.b32.xlu1 %v768_v42, %s1256_s24  ;;  %v432_v42 = vsel %vm430_vm2, %v1688_v33, %v417_v38  ;;  %v268_v14 = vsel %vm214_vm10, %v252_v20, 0.0  ;;  %v629_v17 = vsel %vm404_vm5, %v613_v12, 0.0 }
 0x167   :  { %v448_v33 = vsel %vm405_vm9, %v432_v42, 0.0  ;;  %v296_v38 = vmul.f32 %v1639_v9, %v268_v14  ;;  %v653_v0 = vmul.f32 %v1544_v24, %v629_v17  ;;  %v614_v29 = vsel %vm612_vm7, %v597_v28, %v1602_v1 }
 0x168   :  { %v479_v62 = vadd.f32 %v471_v51, %v392_v45  ;;  %v836_v23 = vpop.permute.xlu1 %835  ;;  %v787_v47 = vpop.permute.xlu0 %786  ;;  %v472_v31 = vmul.f32 %v1477_v52, %v448_v33 }
 0x169   :  { %v852_v52 = vsel %vm851_vm11, %v1700_v35, %v836_v23 }
 0x16a   :  { %v554_v10 = vadd.f32 %v546_v46, %v479_v62  ;;  %804 = vrot.lane.b32.xlu1 %v770_v6, %s1256_s24  ;;  %v523_v62 = vsel %vm214_vm10, %v507_v2, 0.0  ;;  %v704_v6 = vsel %vm213_vm3, %v688_v32, 0.0  ;;  %v579_v2 = vmul.f32 %v1515_v11, %v1501_v8 }
 0x16b   :  { %v547_v12 = vmul.f32 %v1455_v41, %v523_v62  ;;  %v728_v42 = vmul.f32 %v1572_v36, %v704_v6  ;;  %v868_v35 = vsel %vm404_vm5, %v852_v52, 0.0 }
 0x16c   :  { %v785_v51 = vpop.permute.xlu1 %784  ;;  %v239_v48 = vpop.permute.xlu0 %238  ;;  %v586_v22 = vadd.f32 %v578_v3, %v554_v10  ;;  %v689_v10 = vsel %vm687_vm8, %v672_v56, %v1479_v53 }
 0x16d   :  { %v705_v41 = vsel %vm214_vm10, %v689_v10, 0.0 }
 0x16e   :  { %v661_v20 = vadd.f32 %v653_v0, %v586_v22  ;;  %v853_v22 = vsel %vm851_vm11, %v836_v23, %v1681_v59  ;;  %v729_v8 = vmul.f32 %v1572_v36, %v705_v41 }
 0x16f   :  { %v869_v6 = vsel %vm405_vm9, %v853_v22, 0.0 }
 0x170   :  { %v356_v45 = vpop.permute.xlu1 %355  ;;  %v1770_v46 = vpop.permute.xlu0 %600  ;;  %v736_v28 = vadd.f32 %v728_v42, %v661_v20  ;;  %v893_v20 = vmul.f32 %v1623_v7, %v869_v6 }
 0x171   :  { %v377_v5 = vsel %vm375_vm6, %v354_v30, %v356_v45  ;;  %v630_v30 = vsel %vm405_vm9, %v614_v29, 0.0  ;;  %v809_v45 = vsel %vm808_vm12, %v785_v51, %v787_v47  ;;  %v810_v29 = vsel %vm808_vm12, %v787_v47, %v1679_v57 }
 0x172   :  { %v393_v9 = vadd.f32 %v377_v5, %v296_v38  ;;  %v654_v56 = vmul.f32 %v1544_v24, %v630_v30  ;;  %v825_v11 = vadd.f32 %v809_v45, %v736_v28  ;;  %v892_v24 = vmul.f32 %v1623_v7, %v868_v35 }
 0x174   :  { %v480_v3 = vadd.f32 %v472_v31, %v393_v9  ;;  %v419_v14 = vpop.permute.xlu1 %418  ;;  %v421_v17 = vpop.permute.xlu0 %420  ;;  %v900_v9 = vadd.f32 %v892_v24, %v825_v11 }
 0x175   :  { %v433_v57 = vsel %vm430_vm2, %v1523_v15, %v419_v14 }
 0x176   :  { %v555_v32 = vadd.f32 %v547_v12, %v480_v3  ;;  %v932_v42 = vadd.f32 %v1644_v16, %v900_v9  ;;  %v449_v35 = vsel %vm404_vm5, %v433_v57, 0.0  ;;  %v581_v57 = vmul.f32 %v1459_v43, %v1549_v25 }
 0x178   :  { %v587_v33 = vadd.f32 %v579_v2, %v555_v32  ;;  %v494_v38 = vpop.permute.xlu1 %493  ;;  %v496_v0 = vpop.permute.xlu0 %495  ;;  %v253_v2 = vsel %vm250_vm1, %v1495_v4, %v239_v48  ;;  %v940_v7 = vmax.f32 %v932_v42, 0.0  ;;  %v434_v32 = vsel %vm430_vm2, %v419_v14, %v421_v17 }
 0x179   :  { %v509_v45 = vsel %vm505_vm4, %v494_v38, %v496_v0  ;;  %v450_v17 = vsel %vm405_vm9, %v434_v32, 0.0 }
 0x17a   :  { %v662_v62 = vadd.f32 %v654_v56, %v587_v33  ;;  %v508_v33 = vsel %vm505_vm4, %v1461_v44, %v494_v38  ;;  %v1832_v14 = vmin.f32 %v940_v7, 6.0  ;;  %v525_v38 = vsel %vm214_vm10, %v509_v45, 0.0 }
 0x17b   :  { %v524_v11 = vsel %vm213_vm3, %v508_v33, 0.0  ;;  %v474_v9 = vmul.f32 %v1444_v37, %v450_v17 }
 0x17c   :  { %v737_v5 = vadd.f32 %v729_v8, %v662_v62  ;;  %v676_v23 = vpop.permute.xlu1 %675  ;;  %v1802_v31 = vpop.permute.xlu0 %677  ;;  %v548_v42 = vmul.f32 %v1487_v61, %v524_v11 }
 0x17e   :  { %v826_v51 = vadd.f32 %v810_v29, %v737_v5  ;;  %v473_v29 = vmul.f32 %v1444_v37, %v449_v35 }
 0x180   :  { %v1807_v12 = vpop.permute.xlu1 %839  ;;  %v1809_v36 = vpop.permute.xlu0 %841  ;;  %v901_v10 = vadd.f32 %v893_v20, %v826_v51 }
 0x182   :  { %v933_v3 = vadd.f32 %v1644_v16, %v901_v10  ;;  %v269_v16 = vsel %vm213_vm3, %v253_v2, 0.0 }
 0x183   :  { %v297_v8 = vmul.f32 %v1473_v50, %v269_v16 }
 0x184   :  { %v241_v30 = vpop.permute.xlu1 %240  ;;  %v362_v52 = vpop.permute.xlu0 %361  ;;  %v941_v28 = vmax.f32 %v933_v3, 0.0  ;;  %v549_v3 = vmul.f32 %v1487_v61, %v525_v38 }
 0x185   :  { %v254_v47 = vsel %vm250_vm1, %v239_v48, %v241_v30  ;;  %v690_v30 = vsel %vm687_vm8, %v676_v23, %v1802_v31 }
 0x186   :  { %v1821_v22 = vmin.f32 %v941_v28, 6.0  ;;  %v270_v48 = vsel %vm214_vm10, %v254_v47, 0.0  ;;  %v706_v61 = vsel %vm213_vm3, %v690_v30, 0.0 }
 0x187   :  { %v298_v62 = vmul.f32 %v1473_v50, %v270_v48  ;;  %v730_v35 = vmul.f32 %v1582_v58, %v706_v61 }
 0x188   :  { %v1819_v41 = vpop.permute.xlu1 %602  ;;  %v243_v56 = vpop.permute.xlu0 %242  ;;  %v956_v5 = vadd.f32 %v1821_v22, %v1832_v14 }
 0x189   :  { %v615_v50 = vsel %vm612_vm7, %v1770_v46, %v1819_v41  ;;  %v580_v46 = vmul.f32 %v1459_v43, %v1535_v19 }
 0x18a   :  { %v631_v37 = vsel %vm404_vm5, %v615_v50, 0.0 }
 0x18b   :  { %v655_v23 = vmul.f32 %v1555_v27, %v631_v37 }
 0x18c   :  { %v360_v6 = vpop.permute.xlu1 %359  ;;  %v423_v24 = vpop.permute.xlu0 %422 }
 0x18d   :  { %v378_v0 = vsel %vm375_vm6, %v1659_v21, %v360_v6  ;;  %v379_v20 = vsel %vm375_vm6, %v360_v6, %v362_v52  ;;  %v255_v6 = vsel %vm250_vm1, %v1495_v4, %v243_v56 }
 0x18e   :  { %v394_v51 = vadd.f32 %v378_v0, %v297_v8  ;;  %v395_v10 = vadd.f32 %v379_v20, %v298_v62  ;;  %957 = vadd.xlane.f32.xlu1 %v956_v5  ;;  %v271_v20 = vsel %vm213_vm3, %v255_v6, 0.0 }
 0x190   :  { %v481_v28 = vadd.f32 %v473_v29, %v394_v51  ;;  %v482_v21 = vadd.f32 %v474_v9, %v395_v10  ;;  %v498_v2 = vpop.permute.xlu1 %497  ;;  %v500_v52 = vpop.permute.xlu0 %499  ;;  %v435_v29 = vsel %vm430_vm2, %v1523_v15, %v423_v24 }
 0x191   :  { %v510_v9 = vsel %vm505_vm4, %v1461_v44, %v498_v2  ;;  %v451_v51 = vsel %vm404_vm5, %v435_v29, 0.0  ;;  %v2181_v29 = vld [vmem:[#allocation5_spill] sm:$0xff] }
 0x192   :  { %v556_v47 = vadd.f32 %v548_v42, %v481_v28  ;;  %v557_v7 = vadd.f32 %v549_v3, %v482_v21  ;;  %v299_v42 = vmul.f32 %v1481_v54, %v271_v20  ;;  %v526_v3 = vsel %vm213_vm3, %v510_v9, 0.0 }
 0x193   :  { %v475_v21 = vmul.f32 %v1452_v40, %v451_v51 }
 0x194   :  { %v605_v32 = vpop.permute.xlu1 %604  ;;  %v1865_v16 = vpop.permute.xlu0 %606  ;;  %v588_v33 = vadd.f32 %v580_v46, %v556_v47  ;;  %v1867_v48 = vadd.f32 %v581_v57, %v557_v7 }
 0x195   :  { %v617_v47 = vsel %vm612_vm7, %v605_v32, %v1865_v16 }
 0x196   :  { %v663_v45 = vadd.f32 %v655_v23, %v588_v33  ;;  %v633_v32 = vsel %vm404_vm5, %v617_v47, 0.0 }
 0x198   :  { %v680_v17 = vpop.permute.xlu1 %679  ;;  %v368_v8 = vpop.permute.xlu0 %367  ;;  %v1870_v19 = vadd.f32 %v730_v35, %v663_v45 }
 0x19c   :  { %v245_v11 = vpop.permute.xlu1 %244  ;;  %v1872_v43 = vpop.permute.xlu0 %246 }
 0x19d   :  { %v256_v5 = vsel %vm250_vm1, %v243_v56, %v245_v11  ;;  %v511_v56 = vsel %vm505_vm4, %v498_v2, %v500_v52 }
 0x19e   :  { %v272_v50 = vsel %vm214_vm10, %v256_v5, 0.0  ;;  %v527_v37 = vsel %vm214_vm10, %v511_v56, 0.0 }
 0x19f   :  { %v300_v30 = vmul.f32 %v1481_v54, %v272_v50  ;;  %v550_v54 = vmul.f32 %v1533_v18, %v526_v3  ;;  %v551_v61 = vmul.f32 %v1533_v18, %v527_v37  ;;  %v691_v3 = vsel %vm687_vm8, %v1802_v31, %v1479_v53 }
 0x1a0   :  { %v425_v25 = vpop.permute.xlu1 %424  ;;  %v1874_v62 = vpop.permute.xlu0 %426  ;;  %v707_v37 = vsel %vm214_vm10, %v691_v3, 0.0 }
 0x1a1   :  { %v436_v38 = vsel %vm430_vm2, %v423_v24, %v425_v25  ;;  %v2180_v25 = vld [vmem:[#allocation4_spill] sm:$0xff]  ;;  %v731_v31 = vmul.f32 %v1582_v58, %v707_v37 }
 0x1a2   :  { %v452_v24 = vsel %vm405_vm9, %v436_v38, 0.0 }
 0x1a3   :  { %v476_v7 = vmul.f32 %v1452_v40, %v452_v24  ;;  %v582_v40 = vmul.f32 %v1561_v26, %v1579_v39  ;;  %v616_v39 = vsel %vm612_vm7, %v1819_v41, %v1602_v1  ;;  %v854_v41 = vsel %vm851_vm11, %v1807_v12, %v1809_v36 }
 0x1a4   :  { %v1882_v0 = vpop.permute.xlu1 %681  ;;  %v1893_v10 = vpop.permute.xlu0 %683 }
 0x1a5   :  { %v692_v23 = vsel %vm687_vm8, %v680_v17, %v1882_v0  ;;  %v657_v17 = vmul.f32 %v2180_v25, %v633_v32 }
 0x1a6   :  { %v708_v18 = vsel %vm213_vm3, %v692_v23, 0.0  ;;  %v2182_v23 = vld [vmem:[#allocation6_spill] sm:$0xff] }
 0x1a7   :  { %v732_v38 = vmul.f32 %v2181_v29, %v708_v18 }
 0x1a8   :  { %v366_v28 = vpop.permute.xlu1 %365  ;;  %v1914_v45 = vpop.permute.xlu0 %503 }
 0x1a9   :  { %v380_v2 = vsel %vm375_vm6, %v1669_v34, %v366_v28  ;;  %v381_v52 = vsel %vm375_vm6, %v366_v28, %v368_v8 }
 0x1aa   :  { %v396_v46 = vadd.f32 %v380_v2, %v299_v42  ;;  %v397_v57 = vadd.f32 %v381_v52, %v300_v30  ;;  %v632_v42 = vsel %vm405_vm9, %v616_v39, 0.0  ;;  %v855_v2 = vsel %vm851_vm11, %v1809_v36, %v1681_v59 }
 0x1ab   :  { %v656_v28 = vmul.f32 %v1555_v27, %v632_v42  ;;  %v870_v27 = vsel %vm404_vm5, %v854_v41, 0.0  ;;  %v257_v39 = vsel %vm250_vm1, %v1495_v4, %v1872_v43  ;;  %v437_v4 = vsel %vm430_vm2, %v1523_v15, %v1874_v62  ;;  %v2184_v41 = vld [vmem:[#allocation16_spill] sm:$0xff] }
 0x1ac   :  { %v483_v33 = vadd.f32 %v475_v21, %v396_v46  ;;  %v484_v35 = vadd.f32 %v476_v7, %v397_v57  ;;  %v1916_v34 = vpop.permute.xlu1 %501  ;;  %v1930_v20 = vpop.permute.xlu0 %610  ;;  %v871_v7 = vsel %vm405_vm9, %v855_v2, 0.0  ;;  %v894_v36 = vmul.f32 %v2182_v23, %v870_v27 }
 0x1ad   :  { %v664_v47 = vadd.f32 %v656_v28, %v1867_v48  ;;  %v513_v15 = vsel %vm505_vm4, %v1916_v34, %v1914_v45  ;;  %v618_v45 = vsel %vm612_vm7, %v1865_v16, %v1602_v1 }
 0x1ae   :  { %v558_v8 = vadd.f32 %v550_v54, %v483_v33  ;;  %v1922_v11 = vadd.f32 %v551_v61, %v484_v35  ;;  %v895_v33 = vmul.f32 %v2182_v23, %v871_v7  ;;  %v529_v23 = vsel %vm214_vm10, %v513_v15, 0.0  ;;  %v2192_v15 = vld [vmem:[#allocation14_spill] sm:$0xff] }
 0x1af   :  { %v739_v54 = vadd.f32 %v731_v31, %v664_v47  ;;  %v2185_v47 = vld [vmem:[#allocation8_spill] sm:$0xff] }
 0x1b0   :  { %v1927_v6 = vpop.permute.xlu1 %608  ;;  %v590_v5 = vadd.f32 %v582_v40, %v558_v8  ;;  %v372_v56 = vpop.permute.xlu0 %371  ;;  %v2183_v40 = vld [vmem:[#allocation15_spill] sm:$0xff] }
 0x1b1   :  { %v382_v2 = vsel %vm375_vm6, %v2184_v41, %v372_v56 }
 0x1b2   :  { %v665_v9 = vadd.f32 %v657_v17, %v590_v5 }
 0x1b4   :  { %v249_v50 = vpop.permute.xlu1 %248  ;;  %v1932_v51 = vadd.f32 %v732_v38, %v665_v9  ;;  %v791_v21 = vpop.permute.xlu0 %790 }
 0x1b5   :  { %v258_v9 = vsel %vm250_vm1, %v1872_v43, %v249_v50 }
 0x1b6   :  { %v274_v3 = vsel %vm214_vm10, %v258_v9, 0.0 }
 0x1b7   :  { %v302_v31 = vmul.f32 %v2185_v47, %v274_v3 }
 0x1b8   :  { %v429_v24 = vpop.permute.xlu1 %428  ;;  %v795_v46 = vpop.permute.xlu0 %794 }
 0x1b9   :  { %v438_v50 = vsel %vm430_vm2, %v1874_v62, %v429_v24  ;;  %v453_v24 = vsel %vm404_vm5, %v437_v4, 0.0  ;;  %v2189_v4 = vld [vmem:[#allocation3_spill] sm:$0xff] }
 0x1ba   :  { %v454_v7 = vsel %vm405_vm9, %v438_v50, 0.0 }
 0x1bc   :  { %v1942_v30 = vpop.permute.xlu1 %685 }
 0x1bd   :  { %v694_v50 = vsel %vm687_vm8, %v1893_v10, %v1942_v30 }
 0x1c0   :  { %v374_v52 = vpop.permute.xlu1 %373 }
 0x1c1   :  { %v383_v43 = vsel %vm375_vm6, %v372_v56, %v374_v52  ;;  %v512_v56 = vsel %vm505_vm4, %v1461_v44, %v1916_v34  ;;  %v693_v44 = vsel %vm687_vm8, %v1882_v0, %v1479_v53  ;;  %v2187_v34 = vld [vmem:[#allocation2_spill] sm:$0xff] }
 0x1c2   :  { %v399_v62 = vadd.f32 %v383_v43, %v302_v31  ;;  %v709_v3 = vsel %vm214_vm10, %v693_v44, 0.0  ;;  %v695_v43 = vsel %vm687_vm8, %v1942_v30, %v1479_v53  ;;  %v710_v53 = vsel %vm213_vm3, %v694_v50, 0.0 }
 0x1c4   :  { %v793_v57 = vpop.permute.xlu1 %792 }
 0x1c5   :  { %v811_v12 = vsel %vm808_vm12, %v791_v21, %v793_v57  ;;  %v812_v61 = vsel %vm808_vm12, %v793_v57, %v795_v46  ;;  %v273_v21 = vsel %vm213_vm3, %v257_v39, 0.0  ;;  %v2186_v57 = vld [vmem:[#allocation9_spill] sm:$0xff] }
 0x1c6   :  { %v827_v48 = vadd.f32 %v811_v12, %v1870_v19  ;;  %v828_v58 = vadd.f32 %v812_v61, %v739_v54  ;;  %v301_v27 = vmul.f32 %v2185_v47, %v273_v21  ;;  %v478_v54 = vmul.f32 %v2186_v57, %v454_v7 }
 0x1c7   :  { %v477_v61 = vmul.f32 %v2186_v57, %v453_v24  ;;  %v711_v24 = vsel %vm214_vm10, %v695_v43, 0.0 }
 0x1c8   :  { %v902_v35 = vadd.f32 %v894_v36, %v827_v48  ;;  %v903_v32 = vadd.f32 %v895_v33, %v828_v58  ;;  %v398_v46 = vadd.f32 %v382_v2, %v301_v27  ;;  %v528_v36 = vsel %vm213_vm3, %v512_v56, 0.0  ;;  %v2191_v27 = vld [vmem:[#allocation11_spill] sm:$0xff] }
 0x1c9   :  { %v1966_v17 = vpop.permute.xlu0 %929  ;;  %v486_v33 = vadd.f32 %v478_v54, %v399_v62  ;;  %v552_v16 = vmul.f32 %v2187_v34, %v528_v36  ;;  %v733_v2 = vmul.f32 %v2181_v29, %v709_v3 }
 0x1ca   :  { %v934_v8 = vadd.f32 %v2183_v40, %v902_v35  ;;  %v935_v18 = vadd.f32 %v2183_v40, %v903_v32  ;;  %v485_v58 = vadd.f32 %v477_v61, %v398_v46  ;;  %v553_v35 = vmul.f32 %v2187_v34, %v529_v23  ;;  %v2188_v32 = vld [vmem:[#allocation10_spill] sm:$0xff]  ;;  %v2193_v61 = vld [vmem:[#allocation13_spill] sm:$0xff] }
 0x1cb   :  { %v583_v40 = vmul.f32 %v1561_v26, %v2188_v32  ;;  %v619_v26 = vsel %vm612_vm7, %v1927_v6, %v1930_v20  ;;  %v734_v23 = vmul.f32 %v2193_v61, %v710_v53 }
 0x1cc   :  { %v942_v5 = vmax.f32 %v934_v8, 0.0  ;;  %v943_v38 = vmax.f32 %v935_v18, 0.0  ;;  %v634_v8 = vsel %vm405_vm9, %v618_v45, 0.0  ;;  %v620_v18 = vsel %vm612_vm7, %v1930_v20, %v1602_v1  ;;  %v2190_v20 = vld [vmem:[#allocation12_spill] sm:$0xff] }
 0x1cd   :  { %v846_v37 = vpop.permute.xlu0 %845  ;;  %v591_v0 = vadd.f32 %v583_v40, %v1922_v11  ;;  %v658_v21 = vmul.f32 %v2180_v25, %v634_v8  ;;  %v636_v1 = vsel %vm405_vm9, %v620_v18, 0.0  ;;  %v585_v11 = vmul.f32 %v2189_v4, %v1633_v13 }
 0x1ce   :  { %v1973_v42 = vmin.f32 %v942_v5, 6.0  ;;  %v1975_v19 = vmin.f32 %v943_v38, 6.0  ;;  %v561_v5 = vadd.f32 %v553_v35, %v486_v33  ;;  %v857_v6 = vsel %vm851_vm11, %v846_v37, %v1681_v59 }
 0x1cf   :  { %v584_v41 = vmul.f32 %v2189_v4, %v2190_v20  ;;  %v635_v10 = vsel %vm404_vm5, %v619_v26, 0.0  ;;  %v666_v13 = vadd.f32 %v658_v21, %v591_v0  ;;  %v660_v7 = vmul.f32 %v2191_v27, %v636_v1 }
 0x1d0   :  { %v959_v28 = vadd.f32 %v1975_v19, %v1973_v42  ;;  %v593_v31 = vadd.f32 %v585_v11, %v561_v5  ;;  %v873_v29 = vsel %vm405_vm9, %v857_v6, 0.0  ;;  %v659_v57 = vmul.f32 %v2191_v27, %v635_v10  ;;  %v2194_v5 = vld [vmem:[#allocation7_spill] sm:$0xff] }
 0x1d1   :  { %v850_v12 = vpop.permute.xlu0 %849  ;;  %v741_v36 = vadd.f32 %v733_v2, %v666_v13  ;;  %v966_v13 = vld [vmem:[%s2146_s5 + $0x8] sm:$0xff] }
 0x1d2   :  { %960 = vadd.xlane.f32.xlu0 %v959_v28  ;;  %v560_v28 = vadd.f32 %v552_v16, %v485_v58  ;;  %v859_v63 = vsel %vm851_vm11, %v850_v12, %v1681_v59  ;;  %v668_v33 = vadd.f32 %v660_v7, %v593_v31  ;;  %v897_v58 = vmul.f32 %v2192_v15, %v873_v29 }
 0x1d3   :  { %v875_v34 = vsel %vm405_vm9, %v859_v63, 0.0  ;;  %v981_v63 = vld [vmem:[%s2147_s6 + $0x8] sm:$0xff] }
 0x1d5   :  { %v2000_v52 = vpop.permute.xlu1 %924  ;;  %v799_v38 = vpop.permute.xlu0 %798 }
 0x1d9   :  { %v844_v48 = vpop.permute.xlu1 %843  ;;  %v803_v56 = vpop.permute.xlu0 %802 }
 0x1da   :  { %v856_v9 = vsel %vm851_vm11, %v844_v48, %v846_v37  ;;  %v592_v37 = vadd.f32 %v584_v41, %v560_v28  ;;  %v735_v48 = vmul.f32 %v2193_v61, %v711_v24 }
 0x1db   :  { %v872_v25 = vsel %vm404_vm5, %v856_v9, 0.0  ;;  %v899_v9 = vmul.f32 %v2194_v5, %v875_v34 }
 0x1dc   :  { %v896_v62 = vmul.f32 %v2192_v15, %v872_v25  ;;  %v743_v18 = vadd.f32 %v735_v48, %v668_v33 }
 0x1dd   :  { %v848_v39 = vpop.permute.xlu1 %847  ;;  %v807_v32 = vpop.permute.xlu0 %806 }
 0x1de   :  { %v858_v54 = vsel %vm851_vm11, %v848_v39, %v850_v12 }
 0x1df   :  { %v874_v59 = vsel %vm404_vm5, %v858_v54, 0.0  ;;  %v980_v54 = vld [vmem:[%s2147_s6] sm:$0xff] }
 0x1e0   :  { %v898_v39 = vmul.f32 %v2194_v5, %v874_v59 }
 0x1e1   :  { %v797_v47 = vpop.permute.xlu1 %796 }
 0x1e2   :  { %v813_v30 = vsel %vm808_vm12, %v797_v47, %v799_v38  ;;  %v965_v47 = vld [vmem:[%s2146_s5] sm:$0xff] }
 0x1e3   :  { %v829_v46 = vadd.f32 %v813_v30, %v1932_v51  ;;  %v667_v51 = vadd.f32 %v659_v57, %v592_v37 }
 0x1e5   :  { %v904_v45 = vadd.f32 %v896_v62, %v829_v46  ;;  %v801_v60 = vpop.permute.xlu1 %800  ;;  %v742_v16 = vadd.f32 %v734_v23, %v667_v51 }
 0x1e6   :  { %v814_v44 = vsel %vm808_vm12, %v799_v38, %v801_v60 }
 0x1e7   :  { %v936_v12 = vadd.f32 %v2000_v52, %v904_v45  ;;  %v830_v35 = vadd.f32 %v814_v44, %v741_v36 }
 0x1e9   :  { %v905_v40 = vadd.f32 %v897_v58, %v830_v35  ;;  %v805_v8 = vpop.permute.xlu1 %804  ;;  %v944_v26 = vmax.f32 %v936_v12, 0.0 }
 0x1ea   :  { %v815_v38 = vsel %vm808_vm12, %v803_v56, %v805_v8  ;;  %v816_v49 = vsel %vm808_vm12, %v805_v8, %v807_v32 }
 0x1eb   :  { %v937_v0 = vadd.f32 %v2000_v52, %v905_v40  ;;  %v831_v55 = vadd.f32 %v815_v38, %v742_v16  ;;  %v832_v3 = vadd.f32 %v816_v49, %v743_v18  ;;  %v2083_v11 = vmin.f32 %v944_v26, 6.0 }
 0x1ed   :  { %v906_v28 = vadd.f32 %v898_v39, %v831_v55  ;;  %v907_v21 = vadd.f32 %v899_v9, %v832_v3  ;;  %v945_v1 = vmax.f32 %v937_v0, 0.0 }
 0x1ef   :  { %v938_v50 = vadd.f32 %v1966_v17, %v906_v28  ;;  %v939_v4 = vadd.f32 %v1966_v17, %v907_v21  ;;  %v2085_v43 = vmin.f32 %v945_v1, 6.0 }
 0x1f1   :  { %v1002_v6 = vadd.f32 %v2085_v43, %v2083_v11  ;;  %v946_v25 = vmax.f32 %v938_v50, 0.0  ;;  %v947_v20 = vmax.f32 %v939_v4, 0.0 }
 0x1f3   :  { %1003 = vadd.xlane.f32.xlu0 %v1002_v6  ;;  %v2089_v52 = vmin.f32 %v946_v25, 6.0  ;;  %v2091_v41 = vmin.f32 %v947_v20, 6.0 }
 0x1f5   :  { %v1005_v2 = vadd.f32 %v2091_v41, %v2089_v52 }
 0x1f7   :  { %1006 = vadd.xlane.f32.xlu1 %v1005_v2 }
 0x21b   :  { %v958_v10 = vpop.xlane.xlu1 %957 }
 0x21c   :  { %v963_v17 = vmul.f32 0.00390625, %v958_v10 }
 0x21e   :  { %v967_v27 = vmul.f32 %v965_v47, %v963_v17 }
 0x220   :  { %v970_v30 = vsel %vm969_vm13, %v967_v27, 0.0 }
 0x25f   :  { %v961_v31 = vpop.xlane.xlu0 %960 }
 0x260   :  { %v964_v7 = vmul.f32 0.00390625, %v961_v31 }
 0x262   :  { %v968_v53 = vmul.f32 %v966_v13, %v964_v7 }
 0x264   :  { %v971_v37 = vsel %vm969_vm13, %v968_v53, 0.0 }
 0x265   :  { %v972_v24 = vadd.f32 %v971_v37, %v970_v30  ;;  %v1071_v30 = vld [vmem:[%s2148_s8] sm:$0xff] }
 0x267   :  { %v973_v29 = vrot.slane %v972_v24, 4 }
 0x269   :  { %v974_v15 = vadd.f32 %v973_v29, %v972_v24 }
 0x26b   :  { %v975_v62 = vrot.slane %v974_v15, 2 }
 0x26d   :  { %v976_v56 = vadd.f32 %v975_v62, %v974_v15 }
 0x26f   :  { %v977_v46 = vrot.slane %v976_v56, 1 }
 0x271   :  { %v978_v57 = vadd.f32 %v977_v46, %v976_v56 }
 0x273   :  { %v979_v61 = vmax.f32 %v978_v57, 0.0 }
 0x275   :  { %v983_v23 = vmul.f32 %v981_v63, %v979_v61  ;;  %v982_v45 = vmul.f32 %v980_v54, %v979_v61 }
 0x277   :  { %v987_v60 = vsel %vm969_vm13, %v983_v23, 0.0  ;;  %v984_v36 = vsel %vm969_vm13, %v982_v45, 0.0 }
 0x278   :  { %988 = vadd.xlane.f32.xlu1 %v987_v60  ;;  %985 = vadd.xlane.f32.xlu0 %v984_v36 }
 0x280   :  { %v1004_v33 = vpop.xlane.xlu0 %1003 }
 0x281   :  { %v1008_v48 = vmul.f32 0.00390625, %v1004_v33 }
 0x283   :  { %v1010_v44 = vmul.f32 %v1008_v48, %v965_v47 }
 0x284   :  { %v1007_v58 = vpop.xlane.xlu1 %1006 }
 0x285   :  { %v1009_v51 = vmul.f32 0.00390625, %v1007_v58  ;;  %v1012_v59 = vsel %vm969_vm13, %v1010_v44, 0.0 }
 0x287   :  { %v1011_v34 = vmul.f32 %v1009_v51, %v966_v13 }
 0x289   :  { %v1013_v12 = vsel %vm969_vm13, %v1011_v34, 0.0 }
 0x28a   :  { %v1014_v35 = vadd.f32 %v1013_v12, %v1012_v59 }
 0x28c   :  { %v1015_v32 = vrot.slane %v1014_v35, 4 }
 0x28e   :  { %v1016_v40 = vadd.f32 %v1015_v32, %v1014_v35 }
 0x290   :  { %v1017_v8 = vrot.slane %v1016_v40, 2 }
 0x292   :  { %v1018_v16 = vadd.f32 %v1017_v8, %v1016_v40 }
 0x294   :  { %v1019_v18 = vrot.slane %v1018_v16, 1 }
 0x296   :  { %v1020_v5 = vadd.f32 %v1019_v18, %v1018_v16 }
 0x298   :  { %v1021_v9 = vmax.f32 %v1020_v5, 0.0 }
 0x29a   :  { %v1023_v39 = vmul.f32 %v1021_v9, %v981_v63  ;;  %v1022_v38 = vmul.f32 %v1021_v9, %v980_v54 }
 0x29c   :  { %v1027_v49 = vsel %vm969_vm13, %v1023_v39, 0.0  ;;  %v1024_v0 = vsel %vm969_vm13, %v1022_v38, 0.0 }
 0x29d   :  { %1028 = vadd.xlane.f32.xlu1 %v1027_v49  ;;  %1025 = vadd.xlane.f32.xlu0 %v1024_v0 }
 0x305   :  { %v989_v55 = vpop.xlane.xlu1 %988  ;;  %v986_v3 = vpop.xlane.xlu0 %985 }
 0x306   :  { %v1165_v26 = vmul.f32 -1.442695, %v989_v55  ;;  %v1164_v28 = vmul.f32 -1.442695, %v986_v3 }
 0x308   :  { %1221 = vpow2.f32 %v1165_v26 }
 0x309   :  { %1223 = vpow2.f32 %v1164_v28 }
 0x312   :  { %v1222_v21 = vpop.eup %1221 }
 0x313   :  { %v1224_v1 = vpop.eup %1223  ;;  %v997_v50 = vadd.f32 1.0, %v1222_v21 }
 0x314   :  { %v996_v4 = vadd.f32 1.0, %v1224_v1 }
 0x315   :  { %1225 = vrcp.f32 %v997_v50 }
 0x316   :  { %1227 = vrcp.f32 %v996_v4 }
 0x31f   :  { %v1226_v6 = vpop.eup %1225 }
 0x320   :  { %v1228_v25 = vpop.eup %1227  ;;  %1049 = vperm.xlu1 %1220, %v1226_v6  }
 0x321   :  { %1044 = vperm.xlu0 %1219, %v1228_v25  }
 0x32a   :  { %v1029_v20 = vpop.xlane.xlu1 %1028  ;;  %v1026_v2 = vpop.xlane.xlu0 %1025 }
 0x32b   :  { %v1167_v10 = vmul.f32 -1.442695, %v1029_v20  ;;  %v1166_v17 = vmul.f32 -1.442695, %v1026_v2 }
 0x32d   :  { %1229 = vpow2.f32 %v1167_v10 }
 0x32e   :  { %1231 = vpow2.f32 %v1166_v17 }
 0x337   :  { %v1230_v47 = vpop.eup %1229 }
 0x338   :  { %v1232_v13 = vpop.eup %1231  ;;  %v1037_v31 = vadd.f32 1.0, %v1230_v47 }
 0x339   :  { %v1036_v27 = vadd.f32 1.0, %v1232_v13 }
 0x33a   :  { %1233 = vrcp.f32 %v1037_v31 }
 0x33b   :  { %1235 = vrcp.f32 %v1036_v27 }
 0x344   :  { %v1234_v7 = vpop.eup %1233 }
 0x345   :  { %v1236_v53 = vpop.eup %1235  ;;  %1059 = vperm.xlu0 %1219, %v1234_v7  }
 0x346   :  { %1054 = vperm.xlu1 %1220, %v1236_v53  }
 0x34a   :  { %1074 = vperm.xlu1 %1220, %v1071_v30  }
 0x39f   :  { %v1050_v37 = vpop.permute.xlu1 %1049 }
 0x3a0   :  { %v1064_v24 = vmul.f32 %v1050_v37, %v1973_v42  ;;  %v1065_v29 = vmul.f32 %v1050_v37, %v1975_v19  ;;  %v1045_v15 = vpop.permute.xlu0 %1044 }
 0x3a1   :  { %v1062_v62 = vmul.f32 %v1045_v15, %v1832_v14  ;;  %v1063_v56 = vmul.f32 %v1045_v15, %v1821_v22  ;;  %v1070_v22 = vld [vmem:[%s2149_s7] sm:$0xff] }
 0x3a3   :  { %v1169_v46 = vpack.c.bf16 %v1065_v29, %v1063_v56  ;;  %v1171_v57 = vpack.c.bf16 %v1064_v24, %v1062_v62 }
 0x3a5   :  { %1170 = vmatprep.subr.bf16.mxu1 %v1169_v46 }
 0x3a6   :  { %1172 = vmatpush1.bf16.msra.mxu1 %v1171_v57 }
 0x3c4   :  { %v1060_v63 = vpop.permute.xlu0 %1059 }
 0x3c5   :  { %v1055_v54 = vpop.permute.xlu1 %1054  ;;  %v1068_v61 = vmul.f32 %v1060_v63, %v2089_v52  ;;  %v1069_v23 = vmul.f32 %v1060_v63, %v2091_v41  ;;  %v1238_v41 = vld [vmem:[%s2141_s0 + $0x8] sm:$0xff] }
 0x3c6   :  { %v1066_v45 = vmul.f32 %v1055_v54, %v2083_v11  ;;  %v1067_v42 = vmul.f32 %v1055_v54, %v2085_v43  ;;  %v1237_v11 = vld [vmem:[%s2141_s0] sm:$0xff] }
 0x3c8   :  { %v1173_v19 = vpack.c.bf16 %v1069_v23, %v1067_v42  ;;  %v1175_v60 = vpack.c.bf16 %v1068_v61, %v1066_v45 }
 0x3c9   :  { %v1075_v14 = vpop.permute.xlu1 %1074 }
 0x3ca   :  { %1174 = vmatprep.subr.bf16.mxu1 %v1173_v19 }
 0x3cb   :  { %1176 = vmatpush1.bf16.msra.mxu1 %v1175_v60 }
 0x3ce   :  { %1168 = vmatmul.mubr.msk.f32.vlgmr.msra.gmra.mrb[0].mxu1 %vm1077_vm14, %v1070_v22 }
 0x4a1   :  { %v1147_v36 = vpop.f32.mrb[0].mxu1 }
 0x4a2   :  { %v1148_v33 = vadd.f32 %v1147_v36, %v1075_v14  ;;  %v1149_v52 = vpop.f32.mrb[1].mxu1 }
 0x4a3   :  { %v1150_v48 = vadd.f32 %v1149_v52, %v1075_v14 }
 0x4a4   :  { %v1152_v43 = vadd.f32 %v1237_v11, %v1148_v33 }
 0x4a5   :  { %v1153_v58 = vadd.f32 %v1238_v41, %v1150_v48 }
 0x4a6   :  { %1154 = vst [vmem:[%s2150_s9] sm:$0xff] %v1152_v43 }
 0x4a7   :  { %1155 = vst [vmem:[%s2150_s9 + $0x8] sm:$0xff] %v1153_v58 }

</bundles_post_ra>
